<compile_context>
chip_gen: v5e
topology: v5e:2x2
jax: 0.10.0
libtpu: 0.0.40
codegen_flags: <defaults>
</compile_context>

<pallas_src>
import functools
import math

import jax
import jax.numpy as jnp
from jax.experimental import pallas as pl
from jax.experimental.pallas import tpu as pltpu

HP = 128   # padded hidden width (lane-dense)
IP = 128   # padded FFN intermediate width
CP = 128   # padded classifier width

CFG = dict(hidden=32, heads=4, layers=2, intermediate=64,
           vocab=64, max_pos=16, type_vocab=2, n_classes=3)


# ---------------------------------------------------------------------------
# In-kernel helpers
# ---------------------------------------------------------------------------
def _masked_layernorm(x, g, b, n_real, eps):
    # LayerNorm over the first `n_real` lanes of a zero-padded (M, HP) activation.
    hp = x.shape[-1]
    col = jax.lax.broadcasted_iota(jnp.int32, (1, hp), 1)
    m = (col < n_real).astype(jnp.float32)
    xm = x * m
    mu = jnp.sum(xm, axis=-1, keepdims=True) * (1.0 / n_real)
    d = (x - mu) * m
    var = jnp.sum(d * d, axis=-1, keepdims=True) * (1.0 / n_real)
    return ((x - mu) * jax.lax.rsqrt(var + eps) * g + b) * m


def _nt_matmul(a, b):
    # (M, K) x (N, K) -> (M, N): contract last dims of both (no transpose op needed).
    return jax.lax.dot_general(a, b, (((1,), (1,)), ((), ())),
                               preferred_element_type=jnp.float32)


# ---------------------------------------------------------------------------
# Fused whole-model Pallas kernel (grid over layers)
# ---------------------------------------------------------------------------
def _bert_fused_kernel(nh, dh, h_real, scale, eps,
                       x0_ref, amask_ref, embg_ref, embb_ref,
                       wqkv_ref, bqkv_ref, wo_ref, bo_ref, ln1g_ref, ln1b_ref,
                       wi_ref, bi_ref, wf_ref, bf_ref, ln2g_ref, ln2b_ref,
                       bsel_ref, pw_ref, pb_ref, ow_ref, ob_ref,
                       out_ref, x_scr):
    l = pl.program_id(0)
    last = pl.num_programs(0) - 1
    bf16 = jnp.bfloat16

    # embedding LayerNorm only on the first grid step; activation stays in VMEM scratch.
    @pl.when(l == 0)
    def _():
        x_scr[...] = _masked_layernorm(x0_ref[...], embg_ref[...], embb_ref[...],
                                       h_real, eps)

    x = x_scr[...]                                   # (M, HP), padded lanes zero
    m_rows, hp = x.shape

    # ---- fused QKV projection: one bf16 MXU matmul, lane-aligned slices ----
    qkv = jnp.dot(x.astype(bf16), wqkv_ref[0],
                  preferred_element_type=jnp.float32) + bqkv_ref[0]
    q = qkv[:, 0 * hp:1 * hp]
    k = qkv[:, 1 * hp:2 * hp]
    v = qkv[:, 2 * hp:3 * hp]

    # per-head lane masks (compile-time constants), built once per layer step
    lane = jax.lax.broadcasted_iota(jnp.int32, (nh, hp), 1)
    hidx = jax.lax.broadcasted_iota(jnp.int32, (nh, hp), 0)
    hm = ((lane >= hidx * dh) & (lane < (hidx + 1) * dh)).astype(jnp.float32)  # (nh, HP)

    # ---- attention: heads stacked along rows -> 2 matmuls + 1 vectorized softmax ----
    q_heads = (q[None, :, :] * hm[:, None, :]).reshape(nh * m_rows, hp)       # (nh*M, HP)
    s = _nt_matmul(q_heads.astype(bf16), k.astype(bf16)) * scale + amask_ref[...]
    s = s - jnp.max(s, axis=-1, keepdims=True)
    p = jnp.exp(s)
    p = p * pl.reciprocal(jnp.sum(p, axis=-1, keepdims=True), approx=True)
    ctxh = jnp.dot(p.astype(bf16), v.astype(bf16),
                   preferred_element_type=jnp.float32)                        # (nh*M, HP)
    ctx = jnp.sum(ctxh.reshape(nh, m_rows, hp) * hm[:, None, :], axis=0)      # (M, HP)

    # ---- attention output projection + residual + LN ----
    attn = jnp.dot(ctx.astype(bf16), wo_ref[0],
                   preferred_element_type=jnp.float32) + bo_ref[0]
    x1 = _masked_layernorm(x + attn, ln1g_ref[0], ln1b_ref[0], h_real, eps)

    # ---- FFN + residual + LN, all resident in VMEM ----
    hh = jnp.dot(x1.astype(bf16), wi_ref[0],
                 preferred_element_type=jnp.float32) + bi_ref[0]
    hh = jax.nn.gelu(hh, approximate=True)   # TODO(synk): HF BERT uses exact (erf) GELU
    ff = jnp.dot(hh.astype(bf16), wf_ref[0],
                 preferred_element_type=jnp.float32) + bf_ref[0]
    x_new = _masked_layernorm(x1 + ff, ln2g_ref[0], ln2b_ref[0], h_real, eps)
    x_scr[...] = x_new

    # ---- CLS extraction + pooler(tanh) + dropout(identity @ eval) + classifier ----
    @pl.when(l == last)
    def _():
        cls = jnp.dot(bsel_ref[...], x_new, preferred_element_type=jnp.float32)  # (B, HP)
        pooled = jnp.tanh(jnp.dot(cls.astype(bf16), pw_ref[...],
                                  preferred_element_type=jnp.float32) + pb_ref[...])
        out_ref[...] = (jnp.dot(pooled.astype(bf16), ow_ref[...],
                                preferred_element_type=jnp.float32) + ob_ref[...])


# ---------------------------------------------------------------------------
# Parameters
# ---------------------------------------------------------------------------
def init_params(key, cfg):
    H, I = cfg["hidden"], cfg["intermediate"]
    V, P, T, C = cfg["vocab"], cfg["max_pos"], cfg["type_vocab"], cfg["n_classes"]
    keys = iter(jax.random.split(key, 8 * cfg["layers"] + 8))

    def nrm(shape):
        return 0.02 * jax.random.normal(next(keys), shape, jnp.float32)

    params = {
        "word_emb": nrm((V, H)),
        "pos_emb": nrm((P, H)),
        "type_emb": nrm((T, H)),
        "emb_ln_g": jnp.ones((H,), jnp.float32),
        "emb_ln_b": jnp.zeros((H,), jnp.float32),
        "pooler_w": nrm((H, H)), "pooler_b": jnp.zeros((H,), jnp.float32),
        "out_w": nrm((H, C)), "out_b": jnp.zeros((C,), jnp.float32),
        "layers": [],
    }
    for _ in range(cfg["layers"]):
        params["layers"].append({
            "wq": nrm((H, H)), "bq": jnp.zeros((H,), jnp.float32),
            "wk": nrm((H, H)), "bk": jnp.zeros((H,), jnp.float32),
            "wv": nrm((H, H)), "bv": jnp.zeros((H,), jnp.float32),
            "wo": nrm((H, H)), "bo": jnp.zeros((H,), jnp.float32),
            "ln1_g": jnp.ones((H,), jnp.float32), "ln1_b": jnp.zeros((H,), jnp.float32),
            "wi": nrm((H, I)), "bi": jnp.zeros((I,), jnp.float32),
            "wf": nrm((I, H)), "bf": jnp.zeros((H,), jnp.float32),
            "ln2_g": jnp.ones((H,), jnp.float32), "ln2_b": jnp.zeros((H,), jnp.float32),
        })
    return params


def _pad2(w, r, c):
    return jnp.zeros((r, c), jnp.float32).at[: w.shape[0], : w.shape[1]].set(w)


def _pad_row(v, c):
    return jnp.zeros((1, c), jnp.float32).at[0, : v.shape[0]].set(v)


def prepare_padded_params(params, cfg):
    """Run ONCE at load time (outside the jitted forward): pad to lane-dense shapes,
    fuse QKV, stack per-layer weights on a leading axis, cast matmul weights to bf16."""
    del cfg  # shapes implied by params

    def stack(fn):
        return jnp.stack([fn(lp) for lp in params["layers"]], axis=0)

    return {
        "word_emb": params["word_emb"],
        "pos_emb": params["pos_emb"],
        "type_emb": params["type_emb"],
        "emb_ln_g": _pad_row(params["emb_ln_g"], HP),
        "emb_ln_b": _pad_row(params["emb_ln_b"], HP),
        # (L, HP, 3*HP) bf16 fused QKV weight / (L, 1, 3*HP) f32 bias
        "wqkv": stack(lambda lp: jnp.concatenate(
            [_pad2(lp["wq"], HP, HP), _pad2(lp["wk"], HP, HP),
             _pad2(lp["wv"], HP, HP)], axis=1)).astype(jnp.bfloat16),
        "bqkv": stack(lambda lp: jnp.concatenate(
            [_pad_row(lp["bq"], HP), _pad_row(lp["bk"], HP),
             _pad_row(lp["bv"], HP)], axis=1)),
        "wo": stack(lambda lp: _pad2(lp["wo"], HP, HP)).astype(jnp.bfloat16),
        "bo": stack(lambda lp: _pad_row(lp["bo"], HP)),
        "ln1_g": stack(lambda lp: _pad_row(lp["ln1_g"], HP)),
        "ln1_b": stack(lambda lp: _pad_row(lp["ln1_b"], HP)),
        "wi": stack(lambda lp: _pad2(lp["wi"], HP, IP)).astype(jnp.bfloat16),
        "bi": stack(lambda lp: _pad_row(lp["bi"], IP)),
        "wf": stack(lambda lp: _pad2(lp["wf"], IP, HP)).astype(jnp.bfloat16),
        "bf": stack(lambda lp: _pad_row(lp["bf"], HP)),
        "ln2_g": stack(lambda lp: _pad_row(lp["ln2_g"], HP)),
        "ln2_b": stack(lambda lp: _pad_row(lp["ln2_b"], HP)),
        "pooler_w": _pad2(params["pooler_w"], HP, HP).astype(jnp.bfloat16),
        "pooler_b": _pad_row(params["pooler_b"], HP),
        "out_w": _pad2(params["out_w"], HP, CP).astype(jnp.bfloat16),
        "out_b": _pad_row(params["out_b"], CP),
    }


# ---------------------------------------------------------------------------
# Forward
# ---------------------------------------------------------------------------
def _full_spec(shape):
    nd = len(shape)
    return pl.BlockSpec(shape, lambda l, _nd=nd: (0,) * _nd)


def _layer_spec(shape):
    nd = len(shape)
    return pl.BlockSpec((1,) + shape, lambda l, _nd=nd: (l,) + (0,) * _nd)


def sentiment_classifier_forward(pp, input_ids, attention_mask, cfg):
    B, S = input_ids.shape
    H, nh, L = cfg["hidden"], cfg["heads"], cfg["layers"]
    dh = H // nh
    M = B * S
    scale = 1.0 / math.sqrt(dh)

    # --- BERT embeddings (gathers are JAX glue) ---
    x = (pp["word_emb"][input_ids]
         + pp["pos_emb"][jnp.arange(S)][None, :, :]
         + pp["type_emb"][jnp.zeros((B, S), jnp.int32)])
    x = x.reshape(M, H).astype(jnp.float32)
    x0 = jnp.pad(x, ((0, 0), (0, HP - H)))                      # (M, HP), lane-dense

    # combined additive attention mask over flattened rows (block-diag per batch,
    # -1e9 on padding keys), tiled per head to match the head-stacked score layout.
    batch_idx = jnp.repeat(jnp.arange(B), S)
    key_valid = attention_mask.reshape(M).astype(bool)
    allow = (batch_idx[:, None] == batch_idx[None, :]) & key_valid[None, :]
    amask = jnp.where(allow, 0.0, -1e9).astype(jnp.float32)     # (M, M)
    amask_t = jnp.tile(amask, (nh, 1))                          # (nh*M, M)

    # CLS row-selection matrix (rows b*S), consumed inside the kernel -> no XLA gather.
    bsel = jax.nn.one_hot(jnp.arange(B) * S, M, dtype=jnp.float32)  # (B, M)

    logits_p = pl.pallas_call(
        functools.partial(_bert_fused_kernel, nh, dh, H, scale, 1e-12),
        out_shape=jax.ShapeDtypeStruct((B, CP), jnp.float32),
        grid=(L,),
        in_specs=[
            _full_spec((M, HP)),           # x0
            _full_spec((nh * M, M)),       # amask_t
            _full_spec((1, HP)),           # emb_ln_g
            _full_spec((1, HP)),           # emb_ln_b
            _layer_spec((HP, 3 * HP)),     # wqkv
            _layer_spec((1, 3 * HP)),      # bqkv
            _layer_spec((HP, HP)),         # wo
            _layer_spec((1, HP)),          # bo
            _layer_spec((1, HP)),          # ln1_g
            _layer_spec((1, HP)),          # ln1_b
            _layer_spec((HP, IP)),         # wi
            _layer_spec((1, IP)),          # bi
            _layer_spec((IP, HP)),         # wf
            _layer_spec((1, HP)),          # bf
            _layer_spec((1, HP)),          # ln2_g
            _layer_spec((1, HP)),          # ln2_b
            _full_spec((B, M)),            # bsel
            _full_spec((HP, HP)),          # pooler_w
            _full_spec((1, HP)),           # pooler_b
            _full_spec((HP, CP)),          # out_w
            _full_spec((1, CP)),           # out_b
        ],
        out_specs=_full_spec((B, CP)),
        scratch_shapes=[pltpu.VMEM((M, HP), jnp.float32)],      # carried activation
        compiler_params=pltpu.CompilerParams(
            dimension_semantics=("arbitrary",),                 # layer axis carries state
            vmem_limit_bytes=32 * 1024 * 1024),
    )(x0, amask_t, pp["emb_ln_g"], pp["emb_ln_b"],
      pp["wqkv"], pp["bqkv"], pp["wo"], pp["bo"], pp["ln1_g"], pp["ln1_b"],
      pp["wi"], pp["bi"], pp["wf"], pp["bf"], pp["ln2_g"], pp["ln2_b"],
      bsel, pp["pooler_w"], pp["pooler_b"], pp["out_w"], pp["out_b"])

    return logits_p[:, :cfg["n_classes"]]


if __name__ == "__main__":
    key = jax.random.PRNGKey(0)
    k_param, k_ids = jax.random.split(key)

    B, S = 2, 8
    params = init_params(k_param, CFG)
    # weight padding / QKV fusion / per-layer stacking / bf16 cast done ONCE at load time
    padded = prepare_padded_params(params, CFG)

    input_ids = jax.random.randint(k_ids, (B, S), 0, CFG["vocab"], dtype=jnp.int32)
    # deterministic attention mask: first sequence full length, second padded
    attention_mask = jnp.array([[1, 1, 1, 1, 1, 1, 1, 1],
                                [1, 1, 1, 1, 1, 0, 0, 0]], dtype=jnp.int32)

    fwd = jax.jit(functools.partial(sentiment_classifier_forward, cfg=CFG))
    logits = fwd(padded, input_ids, attention_mask)
    jax.block_until_ready(logits)
    assert logits.shape == (B, CFG["n_classes"])
    assert bool(jnp.all(jnp.isfinite(logits)))
    print("KERNEL_OK")
</pallas_src>

<mosaic_0001>
module attributes {stable_mosaic.version = 11 : i64} {
  func.func @_bert_fused_kernel(%arg0: i32, %arg1: memref<16x128xf32, #tpu.memory_space<vmem>>, %arg2: memref<64x16xf32, #tpu.memory_space<vmem>>, %arg3: memref<1x128xf32, #tpu.memory_space<vmem>>, %arg4: memref<1x128xf32, #tpu.memory_space<vmem>>, %arg5: memref<1x128x384xbf16, #tpu.memory_space<vmem>>, %arg6: memref<1x1x384xf32, #tpu.memory_space<vmem>>, %arg7: memref<1x128x128xbf16, #tpu.memory_space<vmem>>, %arg8: memref<1x1x128xf32, #tpu.memory_space<vmem>>, %arg9: memref<1x1x128xf32, #tpu.memory_space<vmem>>, %arg10: memref<1x1x128xf32, #tpu.memory_space<vmem>>, %arg11: memref<1x128x128xbf16, #tpu.memory_space<vmem>>, %arg12: memref<1x1x128xf32, #tpu.memory_space<vmem>>, %arg13: memref<1x128x128xbf16, #tpu.memory_space<vmem>>, %arg14: memref<1x1x128xf32, #tpu.memory_space<vmem>>, %arg15: memref<1x1x128xf32, #tpu.memory_space<vmem>>, %arg16: memref<1x1x128xf32, #tpu.memory_space<vmem>>, %arg17: memref<2x16xf32, #tpu.memory_space<vmem>>, %arg18: memref<128x128xbf16, #tpu.memory_space<vmem>>, %arg19: memref<1x128xf32, #tpu.memory_space<vmem>>, %arg20: memref<128x128xbf16, #tpu.memory_space<vmem>>, %arg21: memref<1x128xf32, #tpu.memory_space<vmem>>, %arg22: memref<2x128xf32, #tpu.memory_space<vmem>>, %arg23: memref<16x128xf32, #tpu.memory_space<vmem>>) attributes {dimension_semantics = [#tpu.dimension_semantics<arbitrary>], iteration_bounds = array<i64: 2>, scalar_prefetch = 0 : i64, scratch_operands = 1 : i64, tpu.core_type = #tpu.core_type<tc>, window_params = [{pipeline_mode = #tpu.pipeline_mode<synchronous>, transform_indices = @transform_0, window_bounds = array<i64: 16, 128>}, {pipeline_mode = #tpu.pipeline_mode<synchronous>, transform_indices = @transform_1, window_bounds = array<i64: 64, 16>}, {pipeline_mode = #tpu.pipeline_mode<synchronous>, transform_indices = @transform_2, window_bounds = array<i64: 1, 128>}, {pipeline_mode = #tpu.pipeline_mode<synchronous>, transform_indices = @transform_3, window_bounds = array<i64: 1, 128>}, {transform_indices = @transform_4, window_bounds = array<i64: 1, 128, 384>}, {transform_indices = @transform_5, window_bounds = array<i64: 1, 1, 384>}, {transform_indices = @transform_6, window_bounds = array<i64: 1, 128, 128>}, {transform_indices = @transform_7, window_bounds = array<i64: 1, 1, 128>}, {transform_indices = @transform_8, window_bounds = array<i64: 1, 1, 128>}, {transform_indices = @transform_9, window_bounds = array<i64: 1, 1, 128>}, {transform_indices = @transform_10, window_bounds = array<i64: 1, 128, 128>}, {transform_indices = @transform_11, window_bounds = array<i64: 1, 1, 128>}, {transform_indices = @transform_12, window_bounds = array<i64: 1, 128, 128>}, {transform_indices = @transform_13, window_bounds = array<i64: 1, 1, 128>}, {transform_indices = @transform_14, window_bounds = array<i64: 1, 1, 128>}, {transform_indices = @transform_15, window_bounds = array<i64: 1, 1, 128>}, {pipeline_mode = #tpu.pipeline_mode<synchronous>, transform_indices = @transform_16, window_bounds = array<i64: 2, 16>}, {pipeline_mode = #tpu.pipeline_mode<synchronous>, transform_indices = @transform_17, window_bounds = array<i64: 128, 128>}, {pipeline_mode = #tpu.pipeline_mode<synchronous>, transform_indices = @transform_18, window_bounds = array<i64: 1, 128>}, {pipeline_mode = #tpu.pipeline_mode<synchronous>, transform_indices = @transform_19, window_bounds = array<i64: 128, 128>}, {pipeline_mode = #tpu.pipeline_mode<synchronous>, transform_indices = @transform_20, window_bounds = array<i64: 1, 128>}, {pipeline_mode = #tpu.pipeline_mode<synchronous>, transform_indices = @transform_21, window_bounds = array<i64: 2, 128>}]} {
    %c0_i32 = arith.constant 0 : i32
    %0 = arith.cmpi eq, %arg0, %c0_i32 : i32
    %1 = arith.extui %0 : i1 to i32
    %c0_i32_0 = arith.constant 0 : i32
    %2 = arith.cmpi ne, %1, %c0_i32_0 : i32
    scf.if %2 {
      %c0_69 = arith.constant 0 : index
      %c0_70 = arith.constant 0 : index
      %176 = vector.load %arg1[%c0_69, %c0_70] : memref<16x128xf32, #tpu.memory_space<vmem>>, vector<16x128xf32>
      %c0_71 = arith.constant 0 : index
      %c0_72 = arith.constant 0 : index
      %177 = vector.load %arg3[%c0_71, %c0_72] : memref<1x128xf32, #tpu.memory_space<vmem>>, vector<1x128xf32>
      %c0_73 = arith.constant 0 : index
      %c0_74 = arith.constant 0 : index
      %178 = vector.load %arg4[%c0_73, %c0_74] : memref<1x128xf32, #tpu.memory_space<vmem>>, vector<1x128xf32>
      %179 = tpu.iota {dimensions = array<i32: 1>} : vector<1x128xi32>
      %c32_i32_75 = arith.constant 32 : i32
      %180 = vector.broadcast %c32_i32_75 : i32 to vector<1x128xi32>
      %181 = arith.cmpi slt, %179, %180 : vector<1x128xi32>
      %182 = arith.extui %181 : vector<1x128xi1> to vector<1x128xi32>
      %183 = arith.sitofp %182 : vector<1x128xi32> to vector<1x128xf32>
      %184 = vector.broadcast %183 : vector<1x128xf32> to vector<16x128xf32>
      %185 = arith.mulf %176, %184 : vector<16x128xf32>
      %cst_76 = arith.constant dense<0.000000e+00> : vector<16xf32>
      %186 = vector.multi_reduction <add>, %185, %cst_76 [1] : vector<16x128xf32> to vector<16xf32>
      %187 = vector.shape_cast %186 : vector<16xf32> to vector<16x1xf32>
      %cst_77 = arith.constant 3.125000e-02 : f32
      %188 = vector.broadcast %cst_77 : f32 to vector<16x1xf32>
      %189 = arith.mulf %187, %188 : vector<16x1xf32>
      %190 = vector.broadcast %189 : vector<16x1xf32> to vector<16x128xf32>
      %191 = arith.subf %176, %190 : vector<16x128xf32>
      %192 = vector.broadcast %183 : vector<1x128xf32> to vector<16x128xf32>
      %193 = arith.mulf %191, %192 : vector<16x128xf32>
      %194 = arith.mulf %193, %193 : vector<16x128xf32>
      %cst_78 = arith.constant dense<0.000000e+00> : vector<16xf32>
      %195 = vector.multi_reduction <add>, %194, %cst_78 [1] : vector<16x128xf32> to vector<16xf32>
      %196 = vector.shape_cast %195 : vector<16xf32> to vector<16x1xf32>
      %cst_79 = arith.constant 3.125000e-02 : f32
      %197 = vector.broadcast %cst_79 : f32 to vector<16x1xf32>
      %198 = arith.mulf %196, %197 : vector<16x1xf32>
      %199 = vector.broadcast %189 : vector<16x1xf32> to vector<16x128xf32>
      %200 = arith.subf %176, %199 : vector<16x128xf32>
      %cst_80 = arith.constant 9.99999996E-13 : f32
      %201 = vector.broadcast %cst_80 : f32 to vector<16x1xf32>
      %202 = arith.addf %198, %201 : vector<16x1xf32>
      %203 = math.rsqrt %202 : vector<16x1xf32>
      %204 = vector.broadcast %203 : vector<16x1xf32> to vector<16x128xf32>
      %205 = arith.mulf %200, %204 : vector<16x128xf32>
      %206 = vector.broadcast %177 : vector<1x128xf32> to vector<16x128xf32>
      %207 = arith.mulf %205, %206 : vector<16x128xf32>
      %208 = vector.broadcast %178 : vector<1x128xf32> to vector<16x128xf32>
      %209 = arith.addf %207, %208 : vector<16x128xf32>
      %210 = vector.broadcast %183 : vector<1x128xf32> to vector<16x128xf32>
      %211 = arith.mulf %209, %210 : vector<16x128xf32>
      %c0_81 = arith.constant 0 : index
      %c0_82 = arith.constant 0 : index
      %212 = vector.load %arg23[%c0_81, %c0_82] : memref<16x128xf32, #tpu.memory_space<vmem>>, vector<16x128xf32>
      tpu.vector_store %arg23[%c0_81, %c0_82], %211 {strides = array<i32>} : memref<16x128xf32, #tpu.memory_space<vmem>>, vector<16x128xf32>,
    } else {
    }
    %c0 = arith.constant 0 : index
    %c0_1 = arith.constant 0 : index
    %3 = vector.load %arg23[%c0, %c0_1] : memref<16x128xf32, #tpu.memory_space<vmem>>, vector<16x128xf32>
    %4 = arith.truncf %3 : vector<16x128xf32> to vector<16x128xbf16>
    %c0_2 = arith.constant 0 : index
    %c0_3 = arith.constant 0 : index
    %c0_4 = arith.constant 0 : index
    %5 = vector.load %arg5[%c0_2, %c0_3, %c0_4] : memref<1x128x384xbf16, #tpu.memory_space<vmem>>, vector<1x128x384xbf16>
    %6 = vector.shape_cast %5 : vector<1x128x384xbf16> to vector<128x384xbf16>
    %cst = arith.constant dense<0.000000e+00> : vector<16x384xf32>
    %7 = tpu.matmul %4, %6, %cst {dimension_numbers = #tpu.dot_dimension_numbers<[1], [0], [0], [1], [0, 0, 1, 1], [], []>} : vector<16x128xbf16>, vector<128x384xbf16>, vector<16x384xf32> -> vector<16x384xf32>
    %c0_5 = arith.constant 0 : index
    %c0_6 = arith.constant 0 : index
    %c0_7 = arith.constant 0 : index
    %8 = vector.load %arg6[%c0_5, %c0_6, %c0_7] : memref<1x1x384xf32, #tpu.memory_space<vmem>>, vector<1x1x384xf32>
    %9 = vector.shape_cast %8 : vector<1x1x384xf32> to vector<1x384xf32>
    %10 = vector.broadcast %9 : vector<1x384xf32> to vector<16x384xf32>
    %11 = arith.addf %7, %10 : vector<16x384xf32>
    %12 = vector.extract_strided_slice %11 {offsets = [0, 0], sizes = [16, 128], strides = [1, 1]} : vector<16x384xf32> to vector<16x128xf32>
    %13 = vector.extract_strided_slice %11 {offsets = [0, 128], sizes = [16, 128], strides = [1, 1]} : vector<16x384xf32> to vector<16x128xf32>
    %14 = vector.extract_strided_slice %11 {offsets = [0, 256], sizes = [16, 128], strides = [1, 1]} : vector<16x384xf32> to vector<16x128xf32>
    %15 = tpu.iota {dimensions = array<i32: 1>} : vector<4x128xi32>
    %16 = tpu.iota {dimensions = array<i32: 0>} : vector<4x128xi32>
    %c8_i32 = arith.constant 8 : i32
    %17 = vector.broadcast %c8_i32 : i32 to vector<4x128xi32>
    %18 = arith.muli %16, %17 : vector<4x128xi32>
    %19 = arith.cmpi sge, %15, %18 : vector<4x128xi32>
    %c1_i32 = arith.constant 1 : i32
    %20 = vector.broadcast %c1_i32 : i32 to vector<4x128xi32>
    %21 = arith.addi %16, %20 : vector<4x128xi32>
    %c8_i32_8 = arith.constant 8 : i32
    %22 = vector.broadcast %c8_i32_8 : i32 to vector<4x128xi32>
    %23 = arith.muli %21, %22 : vector<4x128xi32>
    %24 = arith.cmpi slt, %15, %23 : vector<4x128xi32>
    %25 = arith.andi %19, %24 : vector<4x128xi1>
    %26 = arith.extui %25 : vector<4x128xi1> to vector<4x128xi32>
    %27 = arith.sitofp %26 : vector<4x128xi32> to vector<4x128xf32>
    %28 = vector.shape_cast %12 : vector<16x128xf32> to vector<1x16x128xf32>
    %29 = vector.shape_cast %27 : vector<4x128xf32> to vector<4x1x128xf32>
    %30 = vector.broadcast %28 : vector<1x16x128xf32> to vector<4x16x128xf32>
    %31 = vector.broadcast %29 : vector<4x1x128xf32> to vector<4x16x128xf32>
    %32 = arith.mulf %30, %31 : vector<4x16x128xf32>
    %33 = vector.shape_cast %32 : vector<4x16x128xf32> to vector<64x128xf32>
    %34 = arith.truncf %33 : vector<64x128xf32> to vector<64x128xbf16>
    %35 = arith.truncf %13 : vector<16x128xf32> to vector<16x128xbf16>
    %cst_9 = arith.constant dense<0.000000e+00> : vector<64x16xf32>
    %36 = tpu.matmul %34, %35, %cst_9 {dimension_numbers = #tpu.dot_dimension_numbers<[1], [1], [0], [0], [0, 0, 1, 0], [], []>} : vector<64x128xbf16>, vector<16x128xbf16>, vector<64x16xf32> -> vector<64x16xf32>
    %cst_10 = arith.constant 0.353553385 : f32
    %37 = vector.broadcast %cst_10 : f32 to vector<64x16xf32>
    %38 = arith.mulf %36, %37 : vector<64x16xf32>
    %c0_11 = arith.constant 0 : index
    %c0_12 = arith.constant 0 : index
    %39 = vector.load %arg2[%c0_11, %c0_12] : memref<64x16xf32, #tpu.memory_space<vmem>>, vector<64x16xf32>
    %40 = arith.addf %38, %39 : vector<64x16xf32>
    %cst_13 = arith.constant dense<0xFF800000> : vector<64xf32>
    %41 = vector.multi_reduction <maximumf>, %40, %cst_13 [1] : vector<64x16xf32> to vector<64xf32>
    %42 = vector.shape_cast %41 : vector<64xf32> to vector<64x1xf32>
    %43 = vector.broadcast %42 : vector<64x1xf32> to vector<64x16xf32>
    %44 = arith.subf %40, %43 : vector<64x16xf32>
    %45 = math.exp %44 : vector<64x16xf32>
    %cst_14 = arith.constant dense<0.000000e+00> : vector<64xf32>
    %46 = vector.multi_reduction <add>, %45, %cst_14 [1] : vector<64x16xf32> to vector<64xf32>
    %47 = vector.shape_cast %46 : vector<64xf32> to vector<64x1xf32>
    %48 = tpu.reciprocal %47 {approx = true} : vector<64x1xf32> -> vector<64x1xf32>
    %49 = vector.broadcast %48 : vector<64x1xf32> to vector<64x16xf32>
    %50 = arith.mulf %45, %49 : vector<64x16xf32>
    %51 = arith.truncf %50 : vector<64x16xf32> to vector<64x16xbf16>
    %52 = arith.truncf %14 : vector<16x128xf32> to vector<16x128xbf16>
    %cst_15 = arith.constant dense<0.000000e+00> : vector<64x128xf32>
    %53 = tpu.matmul %51, %52, %cst_15 {dimension_numbers = #tpu.dot_dimension_numbers<[1], [0], [0], [1], [0, 0, 1, 1], [], []>} : vector<64x16xbf16>, vector<16x128xbf16>, vector<64x128xf32> -> vector<64x128xf32>
    %54 = vector.shape_cast %53 : vector<64x128xf32> to vector<4x16x128xf32>
    %55 = vector.shape_cast %27 : vector<4x128xf32> to vector<4x1x128xf32>
    %56 = vector.broadcast %55 : vector<4x1x128xf32> to vector<4x16x128xf32>
    %57 = arith.mulf %54, %56 : vector<4x16x128xf32>
    %cst_16 = arith.constant dense<0.000000e+00> : vector<16x128xf32>
    %58 = vector.multi_reduction <add>, %57, %cst_16 [0] : vector<4x16x128xf32> to vector<16x128xf32>
    %59 = arith.truncf %58 : vector<16x128xf32> to vector<16x128xbf16>
    %c0_17 = arith.constant 0 : index
    %c0_18 = arith.constant 0 : index
    %c0_19 = arith.constant 0 : index
    %60 = vector.load %arg7[%c0_17, %c0_18, %c0_19] : memref<1x128x128xbf16, #tpu.memory_space<vmem>>, vector<1x128x128xbf16>
    %61 = vector.shape_cast %60 : vector<1x128x128xbf16> to vector<128x128xbf16>
    %cst_20 = arith.constant dense<0.000000e+00> : vector<16x128xf32>
    %62 = tpu.matmul %59, %61, %cst_20 {dimension_numbers = #tpu.dot_dimension_numbers<[1], [0], [0], [1], [0, 0, 1, 1], [], []>} : vector<16x128xbf16>, vector<128x128xbf16>, vector<16x128xf32> -> vector<16x128xf32>
    %c0_21 = arith.constant 0 : index
    %c0_22 = arith.constant 0 : index
    %c0_23 = arith.constant 0 : index
    %63 = vector.load %arg8[%c0_21, %c0_22, %c0_23] : memref<1x1x128xf32, #tpu.memory_space<vmem>>, vector<1x1x128xf32>
    %64 = vector.shape_cast %63 : vector<1x1x128xf32> to vector<1x128xf32>
    %65 = vector.broadcast %64 : vector<1x128xf32> to vector<16x128xf32>
    %66 = arith.addf %62, %65 : vector<16x128xf32>
    %67 = arith.addf %3, %66 : vector<16x128xf32>
    %c0_24 = arith.constant 0 : index
    %c0_25 = arith.constant 0 : index
    %c0_26 = arith.constant 0 : index
    %68 = vector.load %arg9[%c0_24, %c0_25, %c0_26] : memref<1x1x128xf32, #tpu.memory_space<vmem>>, vector<1x1x128xf32>
    %69 = vector.shape_cast %68 : vector<1x1x128xf32> to vector<1x128xf32>
    %c0_27 = arith.constant 0 : index
    %c0_28 = arith.constant 0 : index
    %c0_29 = arith.constant 0 : index
    %70 = vector.load %arg10[%c0_27, %c0_28, %c0_29] : memref<1x1x128xf32, #tpu.memory_space<vmem>>, vector<1x1x128xf32>
    %71 = vector.shape_cast %70 : vector<1x1x128xf32> to vector<1x128xf32>
    %72 = tpu.iota {dimensions = array<i32: 1>} : vector<1x128xi32>
    %c32_i32 = arith.constant 32 : i32
    %73 = vector.broadcast %c32_i32 : i32 to vector<1x128xi32>
    %74 = arith.cmpi slt, %72, %73 : vector<1x128xi32>
    %75 = arith.extui %74 : vector<1x128xi1> to vector<1x128xi32>
    %76 = arith.sitofp %75 : vector<1x128xi32> to vector<1x128xf32>
    %77 = vector.broadcast %76 : vector<1x128xf32> to vector<16x128xf32>
    %78 = arith.mulf %67, %77 : vector<16x128xf32>
    %cst_30 = arith.constant dense<0.000000e+00> : vector<16xf32>
    %79 = vector.multi_reduction <add>, %78, %cst_30 [1] : vector<16x128xf32> to vector<16xf32>
    %80 = vector.shape_cast %79 : vector<16xf32> to vector<16x1xf32>
    %cst_31 = arith.constant 3.125000e-02 : f32
    %81 = vector.broadcast %cst_31 : f32 to vector<16x1xf32>
    %82 = arith.mulf %80, %81 : vector<16x1xf32>
    %83 = vector.broadcast %82 : vector<16x1xf32> to vector<16x128xf32>
    %84 = arith.subf %67, %83 : vector<16x128xf32>
    %85 = vector.broadcast %76 : vector<1x128xf32> to vector<16x128xf32>
    %86 = arith.mulf %84, %85 : vector<16x128xf32>
    %87 = arith.mulf %86, %86 : vector<16x128xf32>
    %cst_32 = arith.constant dense<0.000000e+00> : vector<16xf32>
    %88 = vector.multi_reduction <add>, %87, %cst_32 [1] : vector<16x128xf32> to vector<16xf32>
    %89 = vector.shape_cast %88 : vector<16xf32> to vector<16x1xf32>
    %cst_33 = arith.constant 3.125000e-02 : f32
    %90 = vector.broadcast %cst_33 : f32 to vector<16x1xf32>
    %91 = arith.mulf %89, %90 : vector<16x1xf32>
    %92 = vector.broadcast %82 : vector<16x1xf32> to vector<16x128xf32>
    %93 = arith.subf %67, %92 : vector<16x128xf32>
    %cst_34 = arith.constant 9.99999996E-13 : f32
    %94 = vector.broadcast %cst_34 : f32 to vector<16x1xf32>
    %95 = arith.addf %91, %94 : vector<16x1xf32>
    %96 = math.rsqrt %95 : vector<16x1xf32>
    %97 = vector.broadcast %96 : vector<16x1xf32> to vector<16x128xf32>
    %98 = arith.mulf %93, %97 : vector<16x128xf32>
    %99 = vector.broadcast %69 : vector<1x128xf32> to vector<16x128xf32>
    %100 = arith.mulf %98, %99 : vector<16x128xf32>
    %101 = vector.broadcast %71 : vector<1x128xf32> to vector<16x128xf32>
    %102 = arith.addf %100, %101 : vector<16x128xf32>
    %103 = vector.broadcast %76 : vector<1x128xf32> to vector<16x128xf32>
    %104 = arith.mulf %102, %103 : vector<16x128xf32>
    %105 = arith.truncf %104 : vector<16x128xf32> to vector<16x128xbf16>
    %c0_35 = arith.constant 0 : index
    %c0_36 = arith.constant 0 : index
    %c0_37 = arith.constant 0 : index
    %106 = vector.load %arg11[%c0_35, %c0_36, %c0_37] : memref<1x128x128xbf16, #tpu.memory_space<vmem>>, vector<1x128x128xbf16>
    %107 = vector.shape_cast %106 : vector<1x128x128xbf16> to vector<128x128xbf16>
    %cst_38 = arith.constant dense<0.000000e+00> : vector<16x128xf32>
    %108 = tpu.matmul %105, %107, %cst_38 {dimension_numbers = #tpu.dot_dimension_numbers<[1], [0], [0], [1], [0, 0, 1, 1], [], []>} : vector<16x128xbf16>, vector<128x128xbf16>, vector<16x128xf32> -> vector<16x128xf32>
    %c0_39 = arith.constant 0 : index
    %c0_40 = arith.constant 0 : index
    %c0_41 = arith.constant 0 : index
    %109 = vector.load %arg12[%c0_39, %c0_40, %c0_41] : memref<1x1x128xf32, #tpu.memory_space<vmem>>, vector<1x1x128xf32>
    %110 = vector.shape_cast %109 : vector<1x1x128xf32> to vector<1x128xf32>
    %111 = vector.broadcast %110 : vector<1x128xf32> to vector<16x128xf32>
    %112 = arith.addf %108, %111 : vector<16x128xf32>
    %113 = arith.mulf %112, %112 : vector<16x128xf32>
    %114 = arith.mulf %112, %113 : vector<16x128xf32>
    %cst_42 = arith.constant 4.471500e-02 : f32
    %115 = vector.broadcast %cst_42 : f32 to vector<16x128xf32>
    %116 = arith.mulf %115, %114 : vector<16x128xf32>
    %117 = arith.addf %112, %116 : vector<16x128xf32>
    %cst_43 = arith.constant 0.797884583 : f32
    %118 = vector.broadcast %cst_43 : f32 to vector<16x128xf32>
    %119 = arith.mulf %118, %117 : vector<16x128xf32>
    %120 = math.tanh %119 : vector<16x128xf32>
    %cst_44 = arith.constant 1.000000e+00 : f32
    %121 = vector.broadcast %cst_44 : f32 to vector<16x128xf32>
    %122 = arith.addf %121, %120 : vector<16x128xf32>
    %cst_45 = arith.constant 5.000000e-01 : f32
    %123 = vector.broadcast %cst_45 : f32 to vector<16x128xf32>
    %124 = arith.mulf %123, %122 : vector<16x128xf32>
    %125 = arith.mulf %112, %124 : vector<16x128xf32>
    %126 = arith.truncf %125 : vector<16x128xf32> to vector<16x128xbf16>
    %c0_46 = arith.constant 0 : index
    %c0_47 = arith.constant 0 : index
    %c0_48 = arith.constant 0 : index
    %127 = vector.load %arg13[%c0_46, %c0_47, %c0_48] : memref<1x128x128xbf16, #tpu.memory_space<vmem>>, vector<1x128x128xbf16>
    %128 = vector.shape_cast %127 : vector<1x128x128xbf16> to vector<128x128xbf16>
    %cst_49 = arith.constant dense<0.000000e+00> : vector<16x128xf32>
    %129 = tpu.matmul %126, %128, %cst_49 {dimension_numbers = #tpu.dot_dimension_numbers<[1], [0], [0], [1], [0, 0, 1, 1], [], []>} : vector<16x128xbf16>, vector<128x128xbf16>, vector<16x128xf32> -> vector<16x128xf32>
    %c0_50 = arith.constant 0 : index
    %c0_51 = arith.constant 0 : index
    %c0_52 = arith.constant 0 : index
    %130 = vector.load %arg14[%c0_50, %c0_51, %c0_52] : memref<1x1x128xf32, #tpu.memory_space<vmem>>, vector<1x1x128xf32>
    %131 = vector.shape_cast %130 : vector<1x1x128xf32> to vector<1x128xf32>
    %132 = vector.broadcast %131 : vector<1x128xf32> to vector<16x128xf32>
    %133 = arith.addf %129, %132 : vector<16x128xf32>
    %134 = arith.addf %104, %133 : vector<16x128xf32>
    %c0_53 = arith.constant 0 : index
    %c0_54 = arith.constant 0 : index
    %c0_55 = arith.constant 0 : index
    %135 = vector.load %arg15[%c0_53, %c0_54, %c0_55] : memref<1x1x128xf32, #tpu.memory_space<vmem>>, vector<1x1x128xf32>
    %136 = vector.shape_cast %135 : vector<1x1x128xf32> to vector<1x128xf32>
    %c0_56 = arith.constant 0 : index
    %c0_57 = arith.constant 0 : index
    %c0_58 = arith.constant 0 : index
    %137 = vector.load %arg16[%c0_56, %c0_57, %c0_58] : memref<1x1x128xf32, #tpu.memory_space<vmem>>, vector<1x1x128xf32>
    %138 = vector.shape_cast %137 : vector<1x1x128xf32> to vector<1x128xf32>
    %139 = tpu.iota {dimensions = array<i32: 1>} : vector<1x128xi32>
    %c32_i32_59 = arith.constant 32 : i32
    %140 = vector.broadcast %c32_i32_59 : i32 to vector<1x128xi32>
    %141 = arith.cmpi slt, %139, %140 : vector<1x128xi32>
    %142 = arith.extui %141 : vector<1x128xi1> to vector<1x128xi32>
    %143 = arith.sitofp %142 : vector<1x128xi32> to vector<1x128xf32>
    %144 = vector.broadcast %143 : vector<1x128xf32> to vector<16x128xf32>
    %145 = arith.mulf %134, %144 : vector<16x128xf32>
    %cst_60 = arith.constant dense<0.000000e+00> : vector<16xf32>
    %146 = vector.multi_reduction <add>, %145, %cst_60 [1] : vector<16x128xf32> to vector<16xf32>
    %147 = vector.shape_cast %146 : vector<16xf32> to vector<16x1xf32>
    %cst_61 = arith.constant 3.125000e-02 : f32
    %148 = vector.broadcast %cst_61 : f32 to vector<16x1xf32>
    %149 = arith.mulf %147, %148 : vector<16x1xf32>
    %150 = vector.broadcast %149 : vector<16x1xf32> to vector<16x128xf32>
    %151 = arith.subf %134, %150 : vector<16x128xf32>
    %152 = vector.broadcast %143 : vector<1x128xf32> to vector<16x128xf32>
    %153 = arith.mulf %151, %152 : vector<16x128xf32>
    %154 = arith.mulf %153, %153 : vector<16x128xf32>
    %cst_62 = arith.constant dense<0.000000e+00> : vector<16xf32>
    %155 = vector.multi_reduction <add>, %154, %cst_62 [1] : vector<16x128xf32> to vector<16xf32>
    %156 = vector.shape_cast %155 : vector<16xf32> to vector<16x1xf32>
    %cst_63 = arith.constant 3.125000e-02 : f32
    %157 = vector.broadcast %cst_63 : f32 to vector<16x1xf32>
    %158 = arith.mulf %156, %157 : vector<16x1xf32>
    %159 = vector.broadcast %149 : vector<16x1xf32> to vector<16x128xf32>
    %160 = arith.subf %134, %159 : vector<16x128xf32>
    %cst_64 = arith.constant 9.99999996E-13 : f32
    %161 = vector.broadcast %cst_64 : f32 to vector<16x1xf32>
    %162 = arith.addf %158, %161 : vector<16x1xf32>
    %163 = math.rsqrt %162 : vector<16x1xf32>
    %164 = vector.broadcast %163 : vector<16x1xf32> to vector<16x128xf32>
    %165 = arith.mulf %160, %164 : vector<16x128xf32>
    %166 = vector.broadcast %136 : vector<1x128xf32> to vector<16x128xf32>
    %167 = arith.mulf %165, %166 : vector<16x128xf32>
    %168 = vector.broadcast %138 : vector<1x128xf32> to vector<16x128xf32>
    %169 = arith.addf %167, %168 : vector<16x128xf32>
    %170 = vector.broadcast %143 : vector<1x128xf32> to vector<16x128xf32>
    %171 = arith.mulf %169, %170 : vector<16x128xf32>
    %c0_65 = arith.constant 0 : index
    %c0_66 = arith.constant 0 : index
    %172 = vector.load %arg23[%c0_65, %c0_66] : memref<16x128xf32, #tpu.memory_space<vmem>>, vector<16x128xf32>
    tpu.vector_store %arg23[%c0_65, %c0_66], %171 {strides = array<i32>} : memref<16x128xf32, #tpu.memory_space<vmem>>, vector<16x128xf32>,
    %c1_i32_67 = arith.constant 1 : i32
    %173 = arith.cmpi eq, %arg0, %c1_i32_67 : i32
    %174 = arith.extui %173 : i1 to i32
    %c0_i32_68 = arith.constant 0 : i32
    %175 = arith.cmpi ne, %174, %c0_i32_68 : i32
    scf.if %175 {
      %c0_69 = arith.constant 0 : index
      %c0_70 = arith.constant 0 : index
      %176 = vector.load %arg17[%c0_69, %c0_70] : memref<2x16xf32, #tpu.memory_space<vmem>>, vector<2x16xf32>
      %cst_71 = arith.constant dense<0.000000e+00> : vector<2x128xf32>
      %177 = tpu.matmul %176, %171, %cst_71 {dimension_numbers = #tpu.dot_dimension_numbers<[1], [0], [0], [1], [0, 0, 1, 1], [], []>} : vector<2x16xf32>, vector<16x128xf32>, vector<2x128xf32> -> vector<2x128xf32>
      %178 = arith.truncf %177 : vector<2x128xf32> to vector<2x128xbf16>
      %c0_72 = arith.constant 0 : index
      %c0_73 = arith.constant 0 : index
      %179 = vector.load %arg18[%c0_72, %c0_73] : memref<128x128xbf16, #tpu.memory_space<vmem>>, vector<128x128xbf16>
      %cst_74 = arith.constant dense<0.000000e+00> : vector<2x128xf32>
      %180 = tpu.matmul %178, %179, %cst_74 {dimension_numbers = #tpu.dot_dimension_numbers<[1], [0], [0], [1], [0, 0, 1, 1], [], []>} : vector<2x128xbf16>, vector<128x128xbf16>, vector<2x128xf32> -> vector<2x128xf32>
      %c0_75 = arith.constant 0 : index
      %c0_76 = arith.constant 0 : index
      %181 = vector.load %arg19[%c0_75, %c0_76] : memref<1x128xf32, #tpu.memory_space<vmem>>, vector<1x128xf32>
      %182 = vector.broadcast %181 : vector<1x128xf32> to vector<2x128xf32>
      %183 = arith.addf %180, %182 : vector<2x128xf32>
      %184 = math.tanh %183 : vector<2x128xf32>
      %185 = arith.truncf %184 : vector<2x128xf32> to vector<2x128xbf16>
      %c0_77 = arith.constant 0 : index
      %c0_78 = arith.constant 0 : index
      %186 = vector.load %arg20[%c0_77, %c0_78] : memref<128x128xbf16, #tpu.memory_space<vmem>>, vector<128x128xbf16>
      %cst_79 = arith.constant dense<0.000000e+00> : vector<2x128xf32>
      %187 = tpu.matmul %185, %186, %cst_79 {dimension_numbers = #tpu.dot_dimension_numbers<[1], [0], [0], [1], [0, 0, 1, 1], [], []>} : vector<2x128xbf16>, vector<128x128xbf16>, vector<2x128xf32> -> vector<2x128xf32>
      %c0_80 = arith.constant 0 : index
      %c0_81 = arith.constant 0 : index
      %188 = vector.load %arg21[%c0_80, %c0_81] : memref<1x128xf32, #tpu.memory_space<vmem>>, vector<1x128xf32>
      %189 = vector.broadcast %188 : vector<1x128xf32> to vector<2x128xf32>
      %190 = arith.addf %187, %189 : vector<2x128xf32>
      %c0_82 = arith.constant 0 : index
      %c0_83 = arith.constant 0 : index
      %191 = vector.load %arg22[%c0_82, %c0_83] : memref<2x128xf32, #tpu.memory_space<vmem>>, vector<2x128xf32>
      tpu.vector_store %arg22[%c0_82, %c0_83], %190 {strides = array<i32>} : memref<2x128xf32, #tpu.memory_space<vmem>>, vector<2x128xf32>,
    } else {
    }
    return
  }
  func.func @transform_0(%arg0: i32) -> (i32, i32) {
    %c0_i32 = arith.constant 0 : i32
    %c0_i32_0 = arith.constant 0 : i32
    %c0_i32_1 = arith.constant 0 : i32
    return %c0_i32, %c0_i32_0 : i32, i32
  }
  func.func @transform_1(%arg0: i32) -> (i32, i32) {
    %c0_i32 = arith.constant 0 : i32
    %c0_i32_0 = arith.constant 0 : i32
    %c0_i32_1 = arith.constant 0 : i32
    return %c0_i32, %c0_i32_0 : i32, i32
  }
  func.func @transform_2(%arg0: i32) -> (i32, i32) {
    %c0_i32 = arith.constant 0 : i32
    %c0_i32_0 = arith.constant 0 : i32
    %c0_i32_1 = arith.constant 0 : i32
    return %c0_i32, %c0_i32_0 : i32, i32
  }
  func.func @transform_3(%arg0: i32) -> (i32, i32) {
    %c0_i32 = arith.constant 0 : i32
    %c0_i32_0 = arith.constant 0 : i32
    %c0_i32_1 = arith.constant 0 : i32
    return %c0_i32, %c0_i32_0 : i32, i32
  }
  func.func @transform_4(%arg0: i32) -> (i32, i32, i32) {
    %c0_i32 = arith.constant 0 : i32
    %c0_i32_0 = arith.constant 0 : i32
    %c0_i32_1 = arith.constant 0 : i32
    return %arg0, %c0_i32, %c0_i32_0 : i32, i32, i32
  }
  func.func @transform_5(%arg0: i32) -> (i32, i32, i32) {
    %c0_i32 = arith.constant 0 : i32
    %c0_i32_0 = arith.constant 0 : i32
    %c0_i32_1 = arith.constant 0 : i32
    return %arg0, %c0_i32, %c0_i32_0 : i32, i32, i32
  }
  func.func @transform_6(%arg0: i32) -> (i32, i32, i32) {
    %c0_i32 = arith.constant 0 : i32
    %c0_i32_0 = arith.constant 0 : i32
    %c0_i32_1 = arith.constant 0 : i32
    return %arg0, %c0_i32, %c0_i32_0 : i32, i32, i32
  }
  func.func @transform_7(%arg0: i32) -> (i32, i32, i32) {
    %c0_i32 = arith.constant 0 : i32
    %c0_i32_0 = arith.constant 0 : i32
    %c0_i32_1 = arith.constant 0 : i32
    return %arg0, %c0_i32, %c0_i32_0 : i32, i32, i32
  }
  func.func @transform_8(%arg0: i32) -> (i32, i32, i32) {
    %c0_i32 = arith.constant 0 : i32
    %c0_i32_0 = arith.constant 0 : i32
    %c0_i32_1 = arith.constant 0 : i32
    return %arg0, %c0_i32, %c0_i32_0 : i32, i32, i32
  }
  func.func @transform_9(%arg0: i32) -> (i32, i32, i32) {
    %c0_i32 = arith.constant 0 : i32
    %c0_i32_0 = arith.constant 0 : i32
    %c0_i32_1 = arith.constant 0 : i32
    return %arg0, %c0_i32, %c0_i32_0 : i32, i32, i32
  }
  func.func @transform_10(%arg0: i32) -> (i32, i32, i32) {
    %c0_i32 = arith.constant 0 : i32
    %c0_i32_0 = arith.constant 0 : i32
    %c0_i32_1 = arith.constant 0 : i32
    return %arg0, %c0_i32, %c0_i32_0 : i32, i32, i32
  }
  func.func @transform_11(%arg0: i32) -> (i32, i32, i32) {
    %c0_i32 = arith.constant 0 : i32
    %c0_i32_0 = arith.constant 0 : i32
    %c0_i32_1 = arith.constant 0 : i32
    return %arg0, %c0_i32, %c0_i32_0 : i32, i32, i32
  }
  func.func @transform_12(%arg0: i32) -> (i32, i32, i32) {
    %c0_i32 = arith.constant 0 : i32
    %c0_i32_0 = arith.constant 0 : i32
    %c0_i32_1 = arith.constant 0 : i32
    return %arg0, %c0_i32, %c0_i32_0 : i32, i32, i32
  }
  func.func @transform_13(%arg0: i32) -> (i32, i32, i32) {
    %c0_i32 = arith.constant 0 : i32
    %c0_i32_0 = arith.constant 0 : i32
    %c0_i32_1 = arith.constant 0 : i32
    return %arg0, %c0_i32, %c0_i32_0 : i32, i32, i32
  }
  func.func @transform_14(%arg0: i32) -> (i32, i32, i32) {
    %c0_i32 = arith.constant 0 : i32
    %c0_i32_0 = arith.constant 0 : i32
    %c0_i32_1 = arith.constant 0 : i32
    return %arg0, %c0_i32, %c0_i32_0 : i32, i32, i32
  }
  func.func @transform_15(%arg0: i32) -> (i32, i32, i32) {
    %c0_i32 = arith.constant 0 : i32
    %c0_i32_0 = arith.constant 0 : i32
    %c0_i32_1 = arith.constant 0 : i32
    return %arg0, %c0_i32, %c0_i32_0 : i32, i32, i32
  }
  func.func @transform_16(%arg0: i32) -> (i32, i32) {
    %c0_i32 = arith.constant 0 : i32
    %c0_i32_0 = arith.constant 0 : i32
    %c0_i32_1 = arith.constant 0 : i32
    return %c0_i32, %c0_i32_0 : i32, i32
  }
  func.func @transform_17(%arg0: i32) -> (i32, i32) {
    %c0_i32 = arith.constant 0 : i32
    %c0_i32_0 = arith.constant 0 : i32
    %c0_i32_1 = arith.constant 0 : i32
    return %c0_i32, %c0_i32_0 : i32, i32
  }
  func.func @transform_18(%arg0: i32) -> (i32, i32) {
    %c0_i32 = arith.constant 0 : i32
    %c0_i32_0 = arith.constant 0 : i32
    %c0_i32_1 = arith.constant 0 : i32
    return %c0_i32, %c0_i32_0 : i32, i32
  }
  func.func @transform_19(%arg0: i32) -> (i32, i32) {
    %c0_i32 = arith.constant 0 : i32
    %c0_i32_0 = arith.constant 0 : i32
    %c0_i32_1 = arith.constant 0 : i32
    return %c0_i32, %c0_i32_0 : i32, i32
  }
  func.func @transform_20(%arg0: i32) -> (i32, i32) {
    %c0_i32 = arith.constant 0 : i32
    %c0_i32_0 = arith.constant 0 : i32
    %c0_i32_1 = arith.constant 0 : i32
    return %c0_i32, %c0_i32_0 : i32, i32
  }
  func.func @transform_21(%arg0: i32) -> (i32, i32) {
    %c0_i32 = arith.constant 0 : i32
    %c0_i32_0 = arith.constant 0 : i32
    %c0_i32_1 = arith.constant 0 : i32
    return %c0_i32, %c0_i32_0 : i32, i32
  }
}

</mosaic_0001>

<bundles_post_ra>
// kernel: sentiment_classifier_forward.1
= control target key start
LH: loop header
LB: loop body
LE: loop exit
PB: predicated region body
PF: predicated region fallthrough
CT: control target
= control target key end

     0   :  { %s3245_s0 = inlined_call_operand.vmem [shape: f32[16,128], index: 0, kind: input, shape index: {}]   ;;  %s3246_s1 = inlined_call_operand.vmem [shape: f32[64,16], index: 1, kind: input, shape index: {}]   ;;  %s3247_s2 = inlined_call_operand.vmem [shape: f32[1,128], index: 2, kind: input, shape index: {}]   ;;  %s3248_s3 = inlined_call_operand.vmem [shape: f32[1,128], index: 3, kind: input, shape index: {}]   ;;  %s3249_s4 = inlined_call_operand.hbm [shape: bf16[2,128,384], index: 4, kind: input, shape index: {}]   ;;  %s3250_s5 = inlined_call_operand.vmem [shape: f32[2,1,384], index: 5, kind: input, shape index: {}]   ;;  %s3251_s6 = inlined_call_operand.vmem [shape: bf16[2,128,128], index: 6, kind: input, shape index: {}]   ;;  %s3252_s7 = inlined_call_operand.vmem [shape: f32[2,1,128], index: 7, kind: input, shape index: {}]   ;;  %s3253_s8 = inlined_call_operand.vmem [shape: f32[2,1,128], index: 8, kind: input, shape index: {}]   ;;  %s3254_s9 = inlined_call_operand.vmem [shape: f32[2,1,128], index: 9, kind: input, shape index: {}]   ;;  %s3255_s10 = inlined_call_operand.vmem [shape: bf16[2,128,128], index: 10, kind: input, shape index: {}]   ;;  %s3256_s11 = inlined_call_operand.vmem [shape: f32[2,1,128], index: 11, kind: input, shape index: {}]   ;;  %s3257_s12 = inlined_call_operand.vmem [shape: bf16[2,128,128], index: 12, kind: input, shape index: {}]   ;;  %s3258_s13 = inlined_call_operand.vmem [shape: f32[2,1,128], index: 13, kind: input, shape index: {}]   ;;  %s3259_s14 = inlined_call_operand.vmem [shape: f32[2,1,128], index: 14, kind: input, shape index: {}]   ;;  %s3260_s15 = inlined_call_operand.vmem [shape: f32[2,1,128], index: 15, kind: input, shape index: {}]   ;;  %s3261_s16 = inlined_call_operand.vmem [shape: f32[2,16], index: 16, kind: input, shape index: {}]   ;;  %s3262_s17 = inlined_call_operand.vmem [shape: bf16[128,128], index: 17, kind: input, shape index: {}]   ;;  %s3263_s18 = inlined_call_operand.vmem [shape: f32[1,128], index: 18, kind: input, shape index: {}]   ;;  %s3264_s19 = inlined_call_operand.vmem [shape: bf16[128,128], index: 19, kind: input, shape index: {}]   ;;  %s3265_s20 = inlined_call_operand.vmem [shape: f32[1,128], index: 20, kind: input, shape index: {}]   ;;  %s3266_s21 = inlined_call_operand.hbm [shape: f32[2,128], index: 21, kind: output, shape index: {}]  }
   0x1   :  { %3277 = sst [smem:[#allocation13_spill]] %s3245_s0 }
   0x2   :  { %3278 = sst [smem:[#allocation14_spill]] %s3246_s1 }
   0x3   :  { %3279 = sst [smem:[#allocation15_spill]] %s3247_s2 }
   0x4   :  { %3280 = sst [smem:[#allocation16_spill]] %s3248_s3 }
   0x5   :  { %3281 = sst [smem:[#allocation17_spill]] %s3249_s4 }
   0x6   :  { %3282 = sst [smem:[#allocation18_spill]] %s3250_s5 }
   0x7   :  { %3283 = sst [smem:[#allocation19_spill]] %s3251_s6 }
   0x8   :  { %3284 = sst [smem:[#allocation20_spill]] %s3261_s16 }
   0x9   :  { %3285 = sst [smem:[#allocation21_spill]] %s3262_s17 }
   0xa   :  { %3286 = sst [smem:[#allocation22_spill]] %s3263_s18 }
   0xb   :  { %3287 = sst [smem:[#allocation23_spill]] %s3264_s19 }
   0xc   :  { %3288 = sst [smem:[#allocation24_spill]] %s3265_s20 }
   0xd   :  { %3289 = sst [smem:[#allocation25_spill]] %s3266_s21 }
   0xe   :  { %26 = vsyncpa [#allocation4], 0 }
   0xf   :  { %28 = vsyncpa [#allocation4 + $0x1], 0 }
  0x10   :  { %29 = vsyncpa [#allocation5], 0  ;;  %s2796_s2 = smov 0   ;;  %s2798_s25 = smov 0  }
  0x11   :  { %s2800_s26 = smov 0   ;;  %s2802_s27 = smov 0  }
  0x12 LB: > { %3290 = sst [smem:[#allocation9_spill]] %s2671_s25  ;;  %s2815_s3 = sadd.s32 4294967295, %s2679_s27   ;;  %s2679_s27 = sphi %s2802_s27, %s3315_s27   ;;  %s2675_s26 = sphi %s2800_s26, %s3318_s26   ;;  %s2671_s25 = sphi %s2798_s25, %s3317_s25   ;;  %s2667_s2 = sphi %s2796_s2, %s3316_s2  }
  0x13   : > { %3291 = sst [smem:[#allocation10_spill]] %s2675_s26  ;;  %s2818_s28 = sadd.s32 1, %s2679_s27  }
  0x14   : > { %3292 = sst [smem:[#allocation11_spill]] %s2818_s28  ;;  %s123_s29 = ssub.s32 %s2679_s27, %s2818_s28 }
  0x15   : > { %s126_s0 = sadd.s32 1, %s2675_s26  ;;  %p124_p0 = scmp.eq.s32.totalorder %s123_s29, 0 }
  0x16   : > { %p133_p1 = scmp.ne.s32.totalorder %s2675_s26, %s2671_s25  ;;  %p134_p2 = scmp.eq.s32.totalorder %s2679_s27, 0 }
  0x17   : > { %p139_p3 = scmp.ne.s32.totalorder %s2671_s25, %s2667_s2  ;;  %p140_p5 = scmp.eq.s32.totalorder %s2815_s3, 0 }
  0x18   : > { %s2828_s4 = scalar_select %p124_p0, %s2675_s26, %s126_s0  }
  0x19   : > { %p135_p4 = por %p134_p2, %p133_p1  ;;  %p2482_p6 = scmp.lt.s32.totalorder %s2679_s27, 2 }
  0x1a   : > { %3293 = sst [smem:[#allocation12_spill]] %s2828_s4  ;;  %p2832_p7 = por %p140_p5, %p139_p3 }
  0x1b   : > { %s602_s5 = sand.u32 1, %s2675_s26   ;;  %s2469_s23 = smul.u32 192, %s2679_s27 }
  0x1c   : > { %s2468_s22 = smul.u32 192, %s602_s5  ;;  %p2838_p8 = pnand %p2482_p6, %p135_p4 }
  0x1d   : > { %s3296_s2 = sld [smem:[#allocation17_spill]]  ;;  %p2124_p9 = scmp.ge.s32.totalorder %s2679_s27, 1 }
  0x1e   : > { %s606_s4 = scalar_lea.vmem [#allocation3], %s2468_s22  ;;  %s603_s18 = scalar_lea.sflag [#allocation4], %s602_s5 }
  0x1f   : > { %s614_s21 = sshll.u32 %s606_s4, 4  ;;  %p2587_p11 = pneg %p2838_p8  ;;  %s615_s21 = int_to_ptr.vmem [resolvable:$true] %s614_s21 }
  0x23   : > { %s3297_s28 = smov %s3296_s2  ;;  %s611_s0 = scalar_lea.hbm %s3296_s2, %s2469_s23 }
  0x24   : > { %s612_s20 = sshll.u32 %s611_s0, 4  ;;  %s2590_s24 = scalar_lea.hbm %s3297_s28, 384  ;;  %s613_s20 = int_to_ptr.hbm [resolvable:$true] %s612_s20 }
  0x25   : > { %s2583_s19 = sshra.s32 %s613_s20, 4  ;;  %s2584_s19 = int_to_ptr.hbm [resolvable:$true] %s2583_s19 }
  0x26   : > { %s2585_s26 = scalar_lea.hbm %s2584_s19, 192  ;;  %p2591_p0 = scmp.lt.s32.totalorder %s2584_s19, %s3297_s28 }
  0x27   : > { %p2586_p10 = scmp.ne.s32.totalorder %s2584_s19, %s2585_s26  ;;  %p2592_p1 = scmp.lt.s32.totalorder %s2590_s24, %s2585_s26 }
  0x29   : > { %p2588_p12 = pnand %p2587_p11, %p2586_p10  ;;  %p2593_p2 = por %p2592_p1, %p2591_p0 }
  0x2b   : > { %p2589_p13 = pneg %p2588_p12 }
  0x2d   : > { %p2594_p3 = pnand %p2593_p2, %p2589_p13 }
  0x2f   : > { %2597 = shalt.err (!%p2594_p3)
}
  0x30   : > { %s2681_s4 = smov 192   ;;  %s2682_s5 = smov 12  }
  0x31   : > { %2481 = dma.hbm_to_vmem [thread:$0]  (!%p2838_p8), %s613_s20, 3072, %s615_s21, %s603_s18, %s2681_s4, %s2681_s4, %s2682_s5  }
  0x32   : > { %p695_p4 = scmp.lt.s32.totalorder %s2679_s27, 3 }
  0x34   : > { %p696_p5 = pnand %p2124_p9, %p695_p4 }
  0x35   : > { %s701_s16 = sand.u32 (!%p696_p5), 1, %s2671_s25  }
  0x36   : > { %699 = sbr.rel (%p696_p5) target bundleno = 2544 (0x9f0), region = 104  ;;  %s702_s19 = scalar_lea.sflag (!%p696_p5), [#allocation4], %s701_s16 }
  0x37   : > { %s2470_s17 = smul.u32 (!%p696_p5), 192, %s701_s16 }
  0x39   : > { %s2860_s26 = scalar_lea.vmem (!%p696_p5), [#allocation3], %s2470_s17 }
  0x3b   : > { %2658 = dma.done.wait (%p2832_p7), %s702_s19, 3072  }
  0x3c   : > { %2660 = vsyncadd (%p2832_p7), %s702_s19, 4294964224  ;;  %p800_p6 = scmp.lt.s32.totalorder %s2815_s3, 1  ;;  %s3298_s6 = sld [smem:[#allocation19_spill]] }
  0x3d   : > { %s3299_s22 = sld [smem:[#allocation18_spill]]  ;;  %p2131_p7 = scmp.ne.s32.totalorder %s2815_s3, 0 }
  0x3e   : > { %s2868_s18 = scalar_select %p800_p6, %s2815_s3, 1 }
  0x3f   : > { %s3300_s2 = sld [smem:[#allocation13_spill]] (!%p2131_p7) }
  0x40   : > { %s2471_s20 = smul.u32 3, %s2868_s18  ;;  %s2401_s21 = sshll.u32 %s2868_s18, 6 }
  0x41   : > { %s825_s0 = scalar_lea.vmem %s3256_s11, %s2868_s18  ;;  %s2906_s23 = scalar_lea.vmem %s3257_s12, %s2401_s21 }
  0x42   : > { %s2875_s30 = scalar_lea.vmem %s3298_s6, %s2401_s21  ;;  %s2897_s6 = scalar_lea.vmem %s3255_s10, %s2401_s21 }
  0x43   : > { %s2884_s4 = scalar_lea.vmem %s3299_s22, %s2471_s20  ;;  %s833_s16 = scalar_lea.vmem %s3258_s13, %s2868_s18 }
  0x44   : > { %s836_s25 = scalar_lea.vmem %s3259_s14, %s2868_s18  ;;  %s839_s17 = scalar_lea.vmem %s3260_s15, %s2868_s18 }
  0x45   : > { %844 = sbr.rel (%p2131_p7) target bundleno = 361 (0x169), region = 112  ;;  %s3301_s24 = smov (!%p2131_p7), %s3300_s2 }
  0x46   : > { %s3302_s19 = sld [smem:[#allocation15_spill]] (!%p2131_p7) }
  0x47   : > { %s3303_s29 = sld [smem:[#allocation16_spill]] (!%p2131_p7) }
  0x4a   : > { %v849_v0 = vlaneseq  ;;  %v845_v2 = vld [vmem:[%s3300_s2] sm:$0xff]  ;;  %v2683_v3 = vmov 0.0   ;;  %v846_v6 = vld [vmem:[%s3301_s24 + $0x8] sm:$0xff] }
  0x4c   : > { %v850_v1 = vand.u32 127, %v849_v0  ;;  %v2522_v32 = vld [vmem:[%s3302_s19] ss:$0 sm:$0xff] }
  0x4d   : > { %v2523_v35 = vld [vmem:[%s3303_s29] ss:$0 sm:$0xff] }
  0x4e   : > { %vm851_vm0 = vcmp.lt.s32.totalorder %v850_v1, 32 }
  0x4f   : > { %v2132_v4 = vsel %vm851_vm0, 1.0, %v2683_v3 }
  0x50   : > { %v854_v5 = vmul.f32 %v2132_v4, %v845_v2  ;;  %v855_v7 = vmul.f32 %v2132_v4, %v846_v6 }
  0x52   : > { %856 = vadd.xlane.f32.xlu0 %v854_v5 }
  0x5a   : > { %858 = vadd.xlane.f32.xlu0 %v855_v7 }
  0xc5   : > { %v857_v8 = vpop.xlane.xlu0 %856 }
  0xc6   : > { %v860_v9 = vmul.f32 0.03125, %v857_v8 }
  0xc8   : > { %v862_v10 = vsub.f32 %v845_v2, %v860_v9 }
  0xca   : > { %v864_v11 = vmul.f32 %v2132_v4, %v862_v10 }
  0xcc   : > { %v866_v12 = vmul.f32 %v864_v11, %v864_v11 }
  0xcd   : > { %v859_v13 = vpop.xlane.xlu0 %858 }
  0xce   : > { %v861_v14 = vmul.f32 0.03125, %v859_v13  ;;  %868 = vadd.xlane.f32.xlu1 %v866_v12 }
  0xd0   : > { %v863_v15 = vsub.f32 %v846_v6, %v861_v14 }
  0xd2   : > { %v865_v16 = vmul.f32 %v2132_v4, %v863_v15 }
  0xd4   : > { %v867_v17 = vmul.f32 %v865_v16, %v865_v16 }
  0xd6   : > { %870 = vadd.xlane.f32.xlu1 %v867_v17 }
 0x141   : > { %v869_v18 = vpop.xlane.xlu1 %868 }
 0x142   : > { %v872_v19 = vmul.f32 0.03125, %v869_v18 }
 0x144   : > { %v874_v20 = vadd.f32 1e-12, %v872_v19 }
 0x146   : > { %2524 = vrsqrt.f32 %v874_v20  ;;  %vm882_vm2 = vweird.f32 %v874_v20 }
 0x149   : > { %v871_v21 = vpop.xlane.xlu1 %870 }
 0x14a   : > { %v873_v22 = vmul.f32 0.03125, %v871_v21 }
 0x14c   : > { %v2525_v23 = vpop.eup %2524  ;;  %v875_v24 = vadd.f32 1e-12, %v873_v22 }
 0x14d   : > { %v877_v25 = vmul.f32 %v2525_v23, %v874_v20  ;;  %vm883_vm1 = vweird.f32 %v2525_v23 }
 0x14e   : > { %2526 = vrsqrt.f32 %v875_v24  ;;  %vm884_vm3 = vmor %vm882_vm2, %vm883_vm1  ;;  %vm892_vm5 = vweird.f32 %v875_v24 }
 0x14f   : > { %v878_v26 = vmul.f32 %v2525_v23, %v877_v25 }
 0x151   : > { %v879_v27 = vmul.f32 0.5, %v878_v26 }
 0x153   : > { %v880_v28 = vsub.f32 1.5, %v879_v27 }
 0x154   : > { %v2527_v29 = vpop.eup %2526 }
 0x155   : > { %v881_v30 = vmul.f32 %v2525_v23, %v880_v28  ;;  %v887_v31 = vmul.f32 %v2527_v29, %v875_v24  ;;  %vm893_vm4 = vweird.f32 %v2527_v29 }
 0x156   : > { %vm894_vm6 = vmor %vm892_vm5, %vm893_vm4 }
 0x157   : > { %v885_v33 = vsel %vm884_vm3, %v2525_v23, %v881_v30  ;;  %v888_v34 = vmul.f32 %v2527_v29, %v887_v31 }
 0x158   : > { %v896_v36 = vmul.f32 %v885_v33, %v862_v10 }
 0x159   : > { %v889_v37 = vmul.f32 0.5, %v888_v34 }
 0x15a   : > { %v901_v38 = vmul.f32 %v2522_v32, %v896_v36 }
 0x15b   : > { %v890_v39 = vsub.f32 1.5, %v889_v37 }
 0x15c   : > { %v906_v40 = vadd.f32 %v2523_v35, %v901_v38 }
 0x15d   : > { %v891_v41 = vmul.f32 %v2527_v29, %v890_v39 }
 0x15e   : > { %v908_v42 = vmul.f32 %v2132_v4, %v906_v40 }
 0x15f   : > { %v895_v43 = vsel %vm894_vm6, %v2527_v29, %v891_v41 }
 0x160   : > { %910 = vst [vmem:[#allocation2] sm:$0xff] %v908_v42  ;;  %v897_v44 = vmul.f32 %v895_v43, %v863_v15 }
 0x162   : > { %v902_v45 = vmul.f32 %v2522_v32, %v897_v44 }
 0x164   : > { %v907_v46 = vadd.f32 %v2523_v35, %v902_v45 }
 0x166   : > { %v909_v47 = vmul.f32 %v2132_v4, %v907_v46 }
 0x168   : > { %911 = vst [vmem:[#allocation2 + $0x8] sm:$0xff] %v909_v47 }
 0x169 PF: > { %v2219_v48 = vld [vmem:[%s2860_s26 + $0xa8] sm:$0xf]  ;;  %v2426_v49 = vld [vmem:[%s2860_s26 + $0xb0] sm:$0xf0]  ;;  %v2425_v50 = vld [vmem:[%s2860_s26 + $0xac] sm:$0xf]  ;;  %v1125_v35 = vlaneseq  ;;  %s3306_s27 = scalar_lea.vmem %s3252_s7, %s2868_s18  ;;  %s3307_s29 = scalar_lea.vmem %s3253_s8, %s2868_s18 }
 0x16a   : > { %v2220_v51 = vor.u32 %v2426_v49, %v2219_v48  ;;  %v2221_v52 = vld [vmem:[%s2860_s26 + $0xb4] sm:$0xf0]  ;;  %v2207_v53 = vld [vmem:[%s2860_s26 + $0x90] sm:$0xf]  ;;  %v2423_v54 = vld [vmem:[%s2860_s26 + $0x98] sm:$0xf0] }
 0x16b   : > { %v2224_v55 = vor.u32 %v2425_v50, %v2221_v52  ;;  %v2422_v56 = vld [vmem:[%s2860_s26 + $0x94] sm:$0xf]  ;;  %v2209_v57 = vld [vmem:[%s2860_s26 + $0x9c] sm:$0xf0]  ;;  %v2208_v58 = vor.u32 %v2423_v54, %v2207_v53  ;;  %v2195_v60 = vld [vmem:[%s2860_s26 + $0x78] sm:$0xf] }
 0x16c   : > { %1083 = vmatpush.bf16.msra.mxu0 %v2220_v51  ;;  %v2212_v59 = vor.u32 %v2422_v56, %v2209_v57  ;;  %v2420_v61 = vld [vmem:[%s2860_s26 + $0x80] sm:$0xf0]  ;;  %v2419_v62 = vld [vmem:[%s2860_s26 + $0x7c] sm:$0xf]  ;;  %v2197_v63 = vld [vmem:[%s2860_s26 + $0x84] sm:$0xf0] }
 0x16d   : > { %1097 = vmatpush.bf16.msra.mxu1 %v2224_v55  ;;  %v2196_v0 = vor.u32 %v2420_v61, %v2195_v60  ;;  %v2200_v1 = vor.u32 %v2419_v62, %v2197_v63  ;;  %v2183_v2 = vld [vmem:[%s2860_s26 + $0x60] sm:$0xf]  ;;  %v2417_v3 = vld [vmem:[%s2860_s26 + $0x68] sm:$0xf0]  ;;  %v2416_v4 = vld [vmem:[%s2860_s26 + $0x64] sm:$0xf] }
 0x16e   : > { %v2185_v5 = vld [vmem:[%s2860_s26 + $0x6c] sm:$0xf0]  ;;  %v2171_v6 = vld [vmem:[%s2860_s26 + $0x48] sm:$0xf]  ;;  %v2184_v7 = vor.u32 %v2417_v3, %v2183_v2  ;;  %v2414_v8 = vld [vmem:[%s2860_s26 + $0x50] sm:$0xf0] }
 0x16f   : > { %v2413_v9 = vld [vmem:[%s2860_s26 + $0x4c] sm:$0xf]  ;;  %v2188_v10 = vor.u32 %v2416_v4, %v2185_v5  ;;  %v2173_v11 = vld [vmem:[%s2860_s26 + $0x54] sm:$0xf0]  ;;  %v2172_v12 = vor.u32 %v2414_v8, %v2171_v6  ;;  %v2159_v14 = vld [vmem:[%s2860_s26 + $0x30] sm:$0xf] }
 0x170   : > { %1084 = vmatpush.bf16.msra.mxu0 %v2208_v58  ;;  %v2176_v13 = vor.u32 %v2413_v9, %v2173_v11  ;;  %v2411_v15 = vld [vmem:[%s2860_s26 + $0x38] sm:$0xf0]  ;;  %v2410_v16 = vld [vmem:[%s2860_s26 + $0x34] sm:$0xf]  ;;  %v2161_v17 = vld [vmem:[%s2860_s26 + $0x3c] sm:$0xf0] }
 0x171   : > { %1098 = vmatpush.bf16.msra.mxu1 %v2212_v59  ;;  %v2160_v18 = vor.u32 %v2411_v15, %v2159_v14  ;;  %v2164_v19 = vor.u32 %v2410_v16, %v2161_v17  ;;  %v2147_v20 = vld [vmem:[%s2860_s26 + $0x18] sm:$0xf]  ;;  %v2408_v21 = vld [vmem:[%s2860_s26 + $0x20] sm:$0xf0]  ;;  %v2407_v22 = vld [vmem:[%s2860_s26 + $0x1c] sm:$0xf] }
 0x172   : > { %v2149_v23 = vld [vmem:[%s2860_s26 + $0x24] sm:$0xf0]  ;;  %v2148_v24 = vor.u32 %v2408_v21, %v2147_v20  ;;  %v2135_v26 = vld [vmem:[%s2860_s26] sm:$0xf]  ;;  %v2405_v27 = vld [vmem:[%s2860_s26 + $0x8] sm:$0xf0] }
 0x173   : > { %v2152_v25 = vor.u32 %v2407_v22, %v2149_v23  ;;  %v2404_v28 = vld [vmem:[%s2860_s26 + $0x4] sm:$0xf]  ;;  %v2137_v29 = vld [vmem:[%s2860_s26 + $0xc] sm:$0xf0]  ;;  %v2136_v30 = vor.u32 %v2405_v27, %v2135_v26  ;;  %v2967_v32 = vld [vmem:[#allocation2 + $0x8] sm:$0xff]  ;;  %v1126_v36 = vand.u32 127, %v1125_v35 }
 0x174   : > { %1085 = vmatpush.bf16.msra.mxu0 %v2196_v0  ;;  %v2965_v31 = vld [vmem:[#allocation2] sm:$0xff]  ;;  %v2140_v33 = vor.u32 %v2404_v28, %v2137_v29  ;;  %v2684_v37 = vmov 0.0   ;;  %v1128_v39 = vshrl.u32 %v1125_v35, 7  ;;  %s3304_s2 = sld [smem:[#allocation14_spill]]  ;;  %vm1215_vm11 = vcmask 130048   ;;  %p2331_p8 = scmp.ne.s32.totalorder %s2815_s3, 1 }
 0x175   : > { %1099 = vmatpush.bf16.msra.mxu1 %v2200_v1  ;;  %v2971_v34 = vpack.c.bf16 %v2967_v32, %v2965_v31  ;;  %vm1451_vm7 = vcmp.lt.s32.totalorder %v1126_v36, 32  ;;  %v2978_v45 = vld [vmem:[%s2884_s4] sm:$0x7]  ;;  %v2427_v35 = vld [vmem:[%s2860_s26 + $0xb8] sm:$0xf0] }
 0x176   : > { %v2975_v38 = vsel %vm1451_vm7, 1.0, %v2684_v37  ;;  %v1131_v40 = vadd.s32 1, %v1128_v39  ;;  %v1129_v43 = vmul.u32 8, %v1128_v39  ;;  %v950_v46 = vperm.slane %v2978_v45, 1  ;;  %v2424_v39 = vld [vmem:[%s2860_s26 + $0xa0] sm:$0xf0] }
 0x177   : > { %v949_v48 = vperm.slane %v2978_v45, 0 }
 0x178   : > { %1086 = vmatpush.bf16.msra.mxu0 %v2184_v7  ;;  %v1132_v44 = vmul.u32 8, %v1131_v40  ;;  %vm1130_vm8 = vcmp.ge.s32.totalorder %v1126_v36, %v1129_v43 }
 0x179   : > { %1100 = vmatpush.bf16.msra.mxu1 %v2188_v10 }
 0x17a   : > { %vm1133_vm9 = vcmp.lt.s32.totalorder %v1126_v36, %v1132_v44  ;;  %s3305_s20 = smov %s3304_s2  ;;  %v2215_v36 = vld [vmem:[%s2860_s26 + $0x98] sm:$0xf]  ;;  %v2203_v44 = vld [vmem:[%s2860_s26 + $0x80] sm:$0xf] }
 0x17b   : > { %vm1134_vm10 = vmand %vm1130_vm8, %vm1133_vm9  ;;  %v1200_v17 = vld [vmem:[%s3305_s20 + $0x8] sm:$0xff]  ;;  %v1201_v22 = vld [vmem:[%s3305_s20 + $0x10] sm:$0xff]  ;;  %v2216_v43 = vor.u32 %v2424_v39, %v2215_v36 }
 0x17c   : > { %1087 = vmatpush.bf16.msra.mxu0 %v2172_v12  ;;  %v2229_v54 = vsel %vm1134_vm10, 1.0, %v2684_v37  ;;  %v1199_v12 = vld [vmem:[%s3304_s2] sm:$0xff]  ;;  %v1202_v27 = vld [vmem:[%s3305_s20 + $0x18] sm:$0xff]  ;;  %s3308_s2 = scalar_lea.vmem %s3254_s9, %s2868_s18 }
 0x17d   : > { %1101 = vmatpush.bf16.msra.mxu1 %v2176_v13  ;;  %v2982_v56 = vperm.slane %v2229_v54, 0  ;;  %v1138_v60 = vrot.slane %v2229_v54, 1  ;;  %v1139_v1 = vrot.slane %v2229_v54, 2  ;;  %v1140_v6 = vrot.slane %v2229_v54, 3 }
 0x17f   : > { %v2986_v61 = vperm.slane %v1138_v60, 0  ;;  %v2990_v2 = vperm.slane %v1139_v1, 0  ;;  %v2994_v7 = vperm.slane %v1140_v6, 0  ;;  %v2155_v6 = vld [vmem:[%s2860_s26 + $0x20] sm:$0xf] }
 0x180   : > { %1088 = vmatpush.bf16.msra.mxu0 %v2160_v18 }
 0x181   : > { %1102 = vmatpush.bf16.msra.mxu1 %v2164_v19 }
 0x184   : > { %1089 = vmatpush.bf16.msra.mxu0 %v2148_v24 }
 0x185   : > { %1103 = vmatpush.bf16.msra.mxu1 %v2152_v25 }
 0x188   : > { %1090 = vmatpush.bf16.msra.mxu0 %v2136_v30 }
 0x189   : > { %1104 = vmatpush.bf16.msra.mxu1 %v2140_v33  ;;  %v2227_v33 = vld [vmem:[%s2860_s26 + $0xb0] sm:$0xf] }
 0x18a   : > { %v2228_v37 = vor.u32 %v2427_v35, %v2227_v33 }
 0x18b   : > { %1091 = vmatmul.bf16.vlgmr.msra.gmra.mxu0 %v2971_v34 }
 0x18c   : > { %1105 = vmatmul.bf16.vlgmr.msra.gmra.mxu1 %v2971_v34  ;;  %1111 = vmatpush.bf16.msra.mxu2 %v2228_v37 }
 0x190   : > { %1112 = vmatpush.bf16.msra.mxu2 %v2216_v43 }
 0x208   : > { %v1092_v41 = vpop.f32.mrf.mxu0 }
 0x209   : > { %v1106_v42 = vpop.f32.mrf.mxu1  ;;  %v1093_v55 = vadd.f32 %v1092_v41, %v949_v48  ;;  %v1203_v41 = vld [vmem:[%s3305_s20 + $0x20] sm:$0xff] }
 0x20a   : > { %v1107_v50 = vadd.f32 %v1106_v42, %v950_v46 }
 0x20b   : > { %v1149_v58 = vmul.f32 %v2982_v56, %v1093_v55  ;;  %v1151_v63 = vmul.f32 %v2986_v61, %v1093_v55  ;;  %v1153_v4 = vmul.f32 %v2990_v2, %v1093_v55  ;;  %v1155_v9 = vmul.f32 %v2994_v7, %v1093_v55 }
 0x210   : > { %v1094_v47 = vpop.f32.mrf.mxu0 }
 0x211   : > { %v1108_v49 = vpop.f32.mrf.mxu1  ;;  %v1095_v52 = vadd.f32 %v1094_v47, %v949_v48 }
 0x212   : > { %v1109_v51 = vadd.f32 %v1108_v49, %v950_v46  ;;  %v2421_v46 = vld [vmem:[%s2860_s26 + $0x88] sm:$0xf0] }
 0x213   : > { %v1150_v57 = vmul.f32 %v2982_v56, %v1095_v52  ;;  %v1152_v62 = vmul.f32 %v2986_v61, %v1095_v52  ;;  %v1154_v3 = vmul.f32 %v2990_v2, %v1095_v52  ;;  %v1156_v8 = vmul.f32 %v2994_v7, %v1095_v52 }
 0x214   : > { %v1161_v53 = vpack.c.bf16 %v1109_v51, %v1107_v50  ;;  %v2204_v49 = vor.u32 %v2421_v46, %v2203_v44  ;;  %v2191_v50 = vld [vmem:[%s2860_s26 + $0x68] sm:$0xf]  ;;  %v2418_v51 = vld [vmem:[%s2860_s26 + $0x70] sm:$0xf0] }
 0x215   : > { %v1157_v59 = vpack.c.bf16 %v1150_v57, %v1149_v58  ;;  %v1158_v0 = vpack.c.bf16 %v1152_v62, %v1151_v63  ;;  %v1159_v5 = vpack.c.bf16 %v1154_v3, %v1153_v4  ;;  %v1160_v10 = vpack.c.bf16 %v1156_v8, %v1155_v9  ;;  %v2179_v57 = vld [vmem:[%s2860_s26 + $0x50] sm:$0xf]  ;;  %v2415_v58 = vld [vmem:[%s2860_s26 + $0x58] sm:$0xf0]  ;;  %v2167_v63 = vld [vmem:[%s2860_s26 + $0x38] sm:$0xf] }
 0x216   : > { %1169 = vmatpush.bf16.xpose.msra.mxu3 %v1161_v53  ;;  %v1204_v53 = vld [vmem:[%s3305_s20 + $0x28] sm:$0xff]  ;;  %1113 = vmatpush.bf16.msra.mxu2 %v2204_v49  ;;  %v2192_v55 = vor.u32 %v2418_v51, %v2191_v50  ;;  %v2180_v62 = vor.u32 %v2415_v58, %v2179_v57  ;;  %v1205_v3 = vld [vmem:[%s3305_s20 + $0x30] sm:$0xff]  ;;  %v2409_v8 = vld [vmem:[%s2860_s26 + $0x28] sm:$0xf0] }
 0x21a   : > { %1114 = vmatpush.bf16.msra.mxu2 %v2192_v55 }
 0x21d   : > { %1170 = vmatmul.bf16.vlgmr.msra.gmra.mxu3 %v1157_v59 }
 0x21e   : > { %1115 = vmatpush.bf16.msra.mxu2 %v2180_v62 }
 0x22d   : > { %1175 = vmatmul.bf16.gmra.mxu3 %v1158_v0  ;;  %v2412_v0 = vld [vmem:[%s2860_s26 + $0x40] sm:$0xf0] }
 0x23d   : > { %1180 = vmatmul.bf16.gmra.mxu3 %v1159_v5  ;;  %v2168_v5 = vor.u32 %v2412_v0, %v2167_v63 }
 0x23f   : > { %1116 = vmatpush.bf16.msra.mxu2 %v2168_v5 }
 0x24d   : > { %1185 = vmatmul.bf16.gmra.mxu3 %v1160_v10 }
 0x2a0   : > { %v1171_v11 = vpop.f32.mrf.mxu3 }
 0x2a1   : > { %v1191_v13 = vmul.f32 0.35355338, %v1171_v11  ;;  %v2156_v11 = vor.u32 %v2409_v8, %v2155_v6 }
 0x2a3   : > { %v3001_v14 = vadd.f32 %v1199_v12, %v1191_v13  ;;  %v2143_v12 = vld [vmem:[%s2860_s26 + $0x8] sm:$0xf]  ;;  %v2406_v13 = vld [vmem:[%s2860_s26 + $0x10] sm:$0xf0]  ;;  %1117 = vmatpush.bf16.msra.mxu2 %v2156_v11 }
 0x2a5   : > { %v1216_v15 = vsel %vm1215_vm11, %v3001_v14, -inf }
 0x2a6   : > { %1217 = vmax.xlane.f32.xlu0 %v1216_v15 }
 0x2a8   : > { %v1173_v16 = vpop.f32.mrf.mxu3 }
 0x2a9   : > { %v1192_v18 = vmul.f32 0.35355338, %v1173_v16  ;;  %v1206_v16 = vld [vmem:[%s3305_s20 + $0x38] sm:$0xff] }
 0x2ab   : > { %v3008_v19 = vadd.f32 %v1200_v17, %v1192_v18  ;;  %v2144_v18 = vor.u32 %v2406_v13, %v2143_v12 }
 0x2ad   : > { %v1219_v20 = vsel %vm1215_vm11, %v3008_v19, -inf  ;;  %1118 = vmatpush.bf16.msra.mxu2 %v2144_v18 }
 0x2ae   : > { %1220 = vmax.xlane.f32.xlu0 %v1219_v20 }
 0x2b0   : > { %v1176_v21 = vpop.f32.mrf.mxu3  ;;  %1119 = vmatmul.bf16.vlgmr.msra.gmra.mxu2 %v2971_v34 }
 0x2b1   : > { %v1193_v23 = vmul.f32 0.35355338, %v1176_v21 }
 0x2b3   : > { %v3015_v24 = vadd.f32 %v1201_v22, %v1193_v23 }
 0x2b5   : > { %v1222_v25 = vsel %vm1215_vm11, %v3015_v24, -inf }
 0x2b6   : > { %1223 = vmax.xlane.f32.xlu1 %v1222_v25 }
 0x2b8   : > { %v1178_v26 = vpop.f32.mrf.mxu3 }
 0x2b9   : > { %v1194_v28 = vmul.f32 0.35355338, %v1178_v26 }
 0x2bb   : > { %v3022_v29 = vadd.f32 %v1202_v27, %v1194_v28 }
 0x2bd   : > { %v1225_v30 = vsel %vm1215_vm11, %v3022_v29, -inf }
 0x2be   : > { %1226 = vmax.xlane.f32.xlu1 %v1225_v30 }
 0x2c0   : > { %v1181_v40 = vpop.f32.mrf.mxu3 }
 0x2c1   : > { %v1195_v42 = vmul.f32 0.35355338, %v1181_v40 }
 0x2c3   : > { %v3035_v47 = vadd.f32 %v1203_v41, %v1195_v42 }
 0x2c5   : > { %v1228_v48 = vsel %vm1215_vm11, %v3035_v47, -inf }
 0x2c6   : > { %1229 = vmax.xlane.f32.xlu2 %v1228_v48 }
 0x2c8   : > { %v1183_v52 = vpop.f32.mrf.mxu3 }
 0x2c9   : > { %v1196_v54 = vmul.f32 0.35355338, %v1183_v52 }
 0x2cb   : > { %v3046_v59 = vadd.f32 %v1204_v53, %v1196_v54 }
 0x2cd   : > { %v1231_v60 = vsel %vm1215_vm11, %v3046_v59, -inf }
 0x2ce   : > { %1232 = vmax.xlane.f32.xlu2 %v1231_v60 }
 0x2d0   : > { %v1186_v1 = vpop.f32.mrf.mxu3 }
 0x2d1   : > { %v1197_v4 = vmul.f32 0.35355338, %v1186_v1 }
 0x2d3   : > { %v1213_v9 = vadd.f32 %v1205_v3, %v1197_v4  ;;  %v951_v4 = vperm.slane %v2978_v45, 2 }
 0x2d5   : > { %v1234_v10 = vsel %vm1215_vm11, %v1213_v9, -inf }
 0x2d6   : > { %1235 = vmax.xlane.f32.xlu0 %v1234_v10 }
 0x2d8   : > { %v1188_v15 = vpop.f32.mrf.mxu3 }
 0x2d9   : > { %v1198_v17 = vmul.f32 0.35355338, %v1188_v15 }
 0x2db   : > { %v1214_v20 = vadd.f32 %v1206_v16, %v1198_v17 }
 0x2dd   : > { %v1237_v21 = vsel %vm1215_vm11, %v1214_v20, -inf }
 0x2de   : > { %1238 = vmax.xlane.f32.xlu1 %v1237_v21 }
 0x319   : > { %v1218_v22 = vpop.xlane.xlu0 %1217 }
 0x31a   : > { %v1240_v23 = vsub.f32 %v3001_v14, %v1218_v22 }
 0x31c   : > { %v1248_v25 = vmul.f32 1.442695, %v1240_v23 }
 0x31e   : > { %2535 = vpow2.f32 %v1248_v25 }
 0x321   : > { %v1221_v26 = vpop.xlane.xlu0 %1220 }
 0x322   : > { %v1241_v27 = vsub.f32 %v3008_v19, %v1221_v26 }
 0x324   : > { %v3067_v28 = vpop.eup %2535  ;;  %v1250_v30 = vmul.f32 1.442695, %v1241_v27 }
 0x325   : > { %v1264_v33 = vsel %vm1215_vm11, %v3067_v28, 0.0 }
 0x326   : > { %2537 = vpow2.f32 %v1250_v30  ;;  %1265 = vadd.xlane.f32.xlu2 %v1264_v33 }
 0x329   : > { %v1224_v35 = vpop.xlane.xlu1 %1223 }
 0x32a   : > { %v1242_v36 = vsub.f32 %v3015_v24, %v1224_v35 }
 0x32c   : > { %v2538_v34 = vpop.eup %2537  ;;  %v1252_v37 = vmul.f32 1.442695, %v1242_v36 }
 0x32d   : > { %v1267_v14 = vsel %vm1215_vm11, %v2538_v34, 0.0 }
 0x32e   : > { %2539 = vpow2.f32 %v1252_v37  ;;  %1268 = vadd.xlane.f32.xlu0 %v1267_v14 }
 0x331   : > { %v1227_v39 = vpop.xlane.xlu1 %1226 }
 0x332   : > { %v1243_v19 = vsub.f32 %v3022_v29, %v1227_v39 }
 0x333   : > { %v1120_v3 = vpop.f32.mrf.mxu2 }
 0x334   : > { %v2540_v40 = vpop.eup %2539  ;;  %v1254_v41 = vmul.f32 1.442695, %v1243_v19  ;;  %v1121_v5 = vadd.f32 %v1120_v3, %v951_v4 }
 0x335   : > { %v1270_v42 = vsel %vm1215_vm11, %v2540_v40, 0.0 }
 0x336   : > { %2541 = vpow2.f32 %v1254_v41  ;;  %1271 = vadd.xlane.f32.xlu1 %v1270_v42  ;;  %v2435_v42 = vld [vmem:[%s2875_s30 + $0x38] sm:$0xff] }
 0x337   : > { %1433 = vmatpush.bf16.msrb.mxu1 %v2435_v42  ;;  %v2451_v42 = vld [vmem:[%s2906_s23 + $0x38] sm:$0xff] }
 0x338   : > { %1680 = vmatpush.bf16.msrb.mxu3 %v2451_v42 }
 0x339   : > { %v1230_v43 = vpop.xlane.xlu2 %1229 }
 0x33a   : > { %v1244_v44 = vsub.f32 %v3035_v47, %v1230_v43 }
 0x33b   : > { %v1122_v6 = vpop.f32.mrf.mxu2 }
 0x33c   : > { %v2542_v46 = vpop.eup %2541  ;;  %v1256_v24 = vmul.f32 1.442695, %v1244_v44  ;;  %v1123_v8 = vadd.f32 %v1122_v6, %v951_v4  ;;  %v2434_v44 = vld [vmem:[%s2875_s30 + $0x30] sm:$0xff] }
 0x33d   : > { %v1273_v48 = vsel %vm1215_vm11, %v2542_v46, 0.0  ;;  %1434 = vmatpush.bf16.msrb.mxu1 %v2434_v44 }
 0x33e   : > { %2543 = vpow2.f32 %v1256_v24  ;;  %1274 = vadd.xlane.f32.xlu2 %v1273_v48  ;;  %v2432_v48 = vld [vmem:[%s2875_s30 + $0x20] sm:$0xff] }
 0x341   : > { %v1233_v49 = vpop.xlane.xlu2 %1232 }
 0x342   : > { %v1245_v50 = vsub.f32 %v3046_v59, %v1233_v49  ;;  %v2431_v49 = vld [vmem:[%s2875_s30 + $0x18] sm:$0xff] }
 0x344   : > { %v2544_v51 = vpop.eup %2543  ;;  %v1258_v29 = vmul.f32 1.442695, %v1245_v50 }
 0x345   : > { %v1276_v52 = vsel %vm1215_vm11, %v2544_v51, 0.0 }
 0x346   : > { %2545 = vpow2.f32 %v1258_v29  ;;  %1277 = vadd.xlane.f32.xlu0 %v1276_v52  ;;  %v2429_v29 = vld [vmem:[%s2875_s30 + $0x8] sm:$0xff] }
 0x349   : > { %v1236_v53 = vpop.xlane.xlu0 %1235 }
 0x34a   : > { %v1246_v54 = vsub.f32 %v1213_v9, %v1236_v53  ;;  %v1308_v9 = vpack.c.bf16 %v1123_v8, %v1121_v5  ;;  %v2428_v53 = vld [vmem:[%s2875_s30] sm:$0xff] }
 0x34c   : > { %v2546_v55 = vpop.eup %2545  ;;  %v1260_v57 = vmul.f32 1.442695, %v1246_v54  ;;  %1328 = vmatpush.bf16.msrb.mxu0 %v1308_v9 }
 0x34d   : > { %v1279_v47 = vsel %vm1215_vm11, %v2546_v55, 0.0 }
 0x34e   : > { %2547 = vpow2.f32 %v1260_v57  ;;  %1280 = vadd.xlane.f32.xlu1 %v1279_v47 }
 0x351   : > { %v1239_v58 = vpop.xlane.xlu1 %1238 }
 0x352   : > { %v1247_v60 = vsub.f32 %v1214_v20, %v1239_v58 }
 0x354   : > { %v2548_v62 = vpop.eup %2547  ;;  %v1262_v63 = vmul.f32 1.442695, %v1247_v60 }
 0x355   : > { %v1282_v59 = vsel %vm1215_vm11, %v2548_v62, 0.0 }
 0x356   : > { %2549 = vpow2.f32 %v1262_v63  ;;  %1283 = vadd.xlane.f32.xlu2 %v1282_v59 }
 0x35c   : > { %v2550_v0 = vpop.eup %2549 }
 0x35d   : > { %v1285_v1 = vsel %vm1215_vm11, %v2550_v0, 0.0 }
 0x35e   : > { %1286 = vadd.xlane.f32.xlu0 %v1285_v1 }
 0x399   : > { %v1266_v10 = vpop.xlane.xlu2 %1265 }
 0x39a   : > { %2551 = vrcp.f32 %v1266_v10 }
 0x3a0   : > { %v2552_v12 = vpop.eup %2551 }
 0x3a1   : > { %v1269_v11 = vpop.xlane.xlu0 %1268  ;;  %v1296_v15 = vmul.f32 %v2552_v12, %v3067_v28 }
 0x3a2   : > { %2553 = vrcp.f32 %v1269_v11 }
 0x3a8   : > { %v2554_v13 = vpop.eup %2553 }
 0x3a9   : > { %v1297_v16 = vmul.f32 %v2554_v13, %v2538_v34  ;;  %v1272_v18 = vpop.xlane.xlu1 %1271 }
 0x3aa   : > { %2555 = vrcp.f32 %v1272_v18 }
 0x3ab   : > { %v1304_v17 = vpack.c.bf16 %v1297_v16, %v1296_v15 }
 0x3ad   : > { %2230 = vmatmul.msk.bf16.vlgmr.msrb.gmra.mxu0 %vm1215_vm11, %v1304_v17 }
 0x3b0   : > { %v2556_v20 = vpop.eup %2555 }
 0x3b1   : > { %v1275_v45 = vpop.xlane.xlu2 %1274  ;;  %v1298_v22 = vmul.f32 %v2556_v20, %v2540_v40 }
 0x3b2   : > { %2557 = vrcp.f32 %v1275_v45 }
 0x3b8   : > { %v2558_v21 = vpop.eup %2557 }
 0x3b9   : > { %v1299_v23 = vmul.f32 %v2558_v21, %v2542_v46  ;;  %v1278_v26 = vpop.xlane.xlu0 %1277  ;;  %v2433_v46 = vld [vmem:[%s2875_s30 + $0x28] sm:$0xff] }
 0x3ba   : > { %2559 = vrcp.f32 %v1278_v26  ;;  %1435 = vmatpush.bf16.msrb.mxu1 %v2433_v46  ;;  %v2450_v46 = vld [vmem:[%s2906_s23 + $0x30] sm:$0xff] }
 0x3bb   : > { %v1305_v25 = vpack.c.bf16 %v1299_v23, %v1298_v22  ;;  %1681 = vmatpush.bf16.msrb.mxu3 %v2450_v46 }
 0x3bd   : > { %2231 = vmatmul.msk.bf16.gmra.mxu0 %vm1215_vm11, %v1305_v25 }
 0x3be   : > { %1436 = vmatpush.bf16.msrb.mxu1 %v2432_v48 }
 0x3c0   : > { %v2560_v28 = vpop.eup %2559 }
 0x3c1   : > { %v1281_v27 = vpop.xlane.xlu1 %1280  ;;  %v1300_v33 = vmul.f32 %v2560_v28, %v2544_v51  ;;  %v2430_v51 = vld [vmem:[%s2875_s30 + $0x10] sm:$0xff]  ;;  %s3311_s30 = sld [smem:[#allocation23_spill]] (!%p2331_p8) }
 0x3c2   : > { %2561 = vrcp.f32 %v1281_v27  ;;  %1437 = vmatpush.bf16.msrb.mxu1 %v2431_v49  ;;  %v2443_v27 = vld [vmem:[%s2897_s6 + $0x38] sm:$0xff]  ;;  %v2442_v28 = vld [vmem:[%s2897_s6 + $0x30] sm:$0xff]  ;;  %v2449_v49 = vld [vmem:[%s2906_s23 + $0x28] sm:$0xff] }
 0x3c3   : > { %1579 = vmatpush.bf16.msrb.mxu2 %v2443_v27  ;;  %1682 = vmatpush.bf16.msrb.mxu3 %v2449_v49 }
 0x3c6   : > { %1438 = vmatpush.bf16.msrb.mxu1 %v2430_v51 }
 0x3c7   : > { %1580 = vmatpush.bf16.msrb.mxu2 %v2442_v28 }
 0x3c8   : > { %v2562_v30 = vpop.eup %2561 }
 0x3c9   : > { %v1301_v35 = vmul.f32 %v2562_v30, %v2546_v55  ;;  %v1284_v34 = vpop.xlane.xlu2 %1283  ;;  %v2441_v30 = vld [vmem:[%s2897_s6 + $0x28] sm:$0xff] }
 0x3ca   : > { %2563 = vrcp.f32 %v1284_v34  ;;  %1439 = vmatpush.bf16.msrb.mxu1 %v2429_v29  ;;  %v2437_v34 = vld [vmem:[%s2897_s6 + $0x8] sm:$0xff] }
 0x3cb   : > { %v1306_v36 = vpack.c.bf16 %v1301_v35, %v1300_v33  ;;  %1581 = vmatpush.bf16.msrb.mxu2 %v2441_v30  ;;  %v2440_v33 = vld [vmem:[%s2897_s6 + $0x20] sm:$0xff]  ;;  %v2439_v35 = vld [vmem:[%s2897_s6 + $0x18] sm:$0xff] }
 0x3cd   : > { %2232 = vmatmul.msk.bf16.gmra.mxu0 %vm1215_vm11, %v1306_v36  ;;  %v2438_v36 = vld [vmem:[%s2897_s6 + $0x10] sm:$0xff] }
 0x3ce   : > { %1440 = vmatpush.bf16.msrb.mxu1 %v2428_v53 }
 0x3cf   : > { %1582 = vmatpush.bf16.msrb.mxu2 %v2440_v33 }
 0x3d0   : > { %v2564_v14 = vpop.eup %2563 }
 0x3d1   : > { %v1287_v37 = vpop.xlane.xlu0 %1286  ;;  %v1302_v19 = vmul.f32 %v2564_v14, %v2548_v62 }
 0x3d2   : > { %2565 = vrcp.f32 %v1287_v37 }
 0x3d3   : > { %1583 = vmatpush.bf16.msrb.mxu2 %v2439_v35 }
 0x3d7   : > { %1584 = vmatpush.bf16.msrb.mxu2 %v2438_v36 }
 0x3d8   : > { %v2566_v39 = vpop.eup %2565 }
 0x3d9   : > { %v1303_v40 = vmul.f32 %v2566_v39, %v2550_v0  ;;  %v2436_v39 = vld [vmem:[%s2897_s6] sm:$0xff]  ;;  %s3310_s6 = sld [smem:[#allocation21_spill]] (!%p2331_p8) }
 0x3db   : > { %v1307_v41 = vpack.c.bf16 %v1303_v40, %v1302_v19  ;;  %1585 = vmatpush.bf16.msrb.mxu2 %v2437_v34 }
 0x3dd   : > { %2233 = vmatmul.msk.bf16.gmra.mxu0 %vm1215_vm11, %v1307_v41 }
 0x3df   : > { %1586 = vmatpush.bf16.msrb.mxu2 %v2436_v39 }
 0x42a   : > { %v1330_v43 = vpop.f32.mrf.mxu0 }
 0x42b   : > { %v1350_v60 = vmul.f32 %v1330_v43, %v2982_v56 }
 0x432   : > { %v1332_v24 = vpop.f32.mrf.mxu0 }
 0x433   : > { %v1351_v62 = vmul.f32 %v1332_v24, %v2982_v56  ;;  %v2528_v56 = vld [vmem:[%s3306_s27] ss:$0 sm:$0xff] }
 0x43a   : > { %v1335_v50 = vpop.f32.mrf.mxu0 }
 0x43b   : > { %v1352_v47 = vmul.f32 %v1335_v50, %v2986_v61 }
 0x43d   : > { %v1358_v0 = vadd.f32 %v1352_v47, %v1350_v60  ;;  %v2529_v60 = vld [vmem:[%s3307_s29] ss:$0 sm:$0xff]  ;;  %s3313_s29 = sld [smem:[#allocation24_spill]] (!%p2331_p8) }
 0x442   : > { %v1337_v52 = vpop.f32.mrf.mxu0 }
 0x443   : > { %v1353_v58 = vmul.f32 %v1337_v52, %v2986_v61  ;;  %v2448_v52 = vld [vmem:[%s2906_s23 + $0x20] sm:$0xff] }
 0x444   : > { %1683 = vmatpush.bf16.msrb.mxu3 %v2448_v52 }
 0x445   : > { %v1361_v1 = vadd.f32 %v1353_v58, %v1351_v62 }
 0x44a   : > { %v1340_v54 = vpop.f32.mrf.mxu0 }
 0x44b   : > { %v1354_v63 = vmul.f32 %v1340_v54, %v2990_v2 }
 0x44d   : > { %v1359_v5 = vadd.f32 %v1358_v0, %v1354_v63  ;;  %v2530_v0 = vld [vmem:[%s3308_s2] ss:$0 sm:$0xff] }
 0x452   : > { %v1342_v55 = vpop.f32.mrf.mxu0 }
 0x453   : > { %v1355_v59 = vmul.f32 %v1342_v55, %v2990_v2 }
 0x455   : > { %v1362_v6 = vadd.f32 %v1361_v1, %v1355_v59 }
 0x45a   : > { %v1345_v57 = vpop.f32.mrf.mxu0 }
 0x45b   : > { %v1356_v3 = vmul.f32 %v1345_v57, %v2994_v7 }
 0x45d   : > { %v1360_v9 = vadd.f32 %v1359_v5, %v1356_v3 }
 0x462   : > { %v1347_v4 = vpop.f32.mrf.mxu0 }
 0x463   : > { %v1357_v8 = vmul.f32 %v1347_v4, %v2994_v7 }
 0x465   : > { %v1363_v61 = vadd.f32 %v1362_v6, %v1357_v8 }
 0x467   : > { %v1364_v10 = vpack.c.bf16 %v1363_v61, %v1360_v9 }
 0x469   : > { %1441 = vmatmul.bf16.vlgmr.msrb.gmra.mxu1 %v1364_v10  ;;  %v2447_v10 = vld [vmem:[%s2906_s23 + $0x18] sm:$0xff] }
 0x46a   : > { %1684 = vmatpush.bf16.msrb.mxu3 %v2447_v10 }
 0x4e6   : > { %v1442_v11 = vpop.f32.mrf.mxu1 }
 0x4e7   : > { %v1443_v2 = vadd.f32 %v2528_v56, %v1442_v11  ;;  %v2445_v11 = vld [vmem:[%s2906_s23 + $0x8] sm:$0xff] }
 0x4e9   : > { %v1447_v12 = vadd.f32 %v1443_v2, %v2965_v31  ;;  %v2444_v2 = vld [vmem:[%s2906_s23] sm:$0xff] }
 0x4eb   : > { %v1454_v13 = vmul.f32 %v2975_v38, %v1447_v12 }
 0x4ed   : > { %1456 = vadd.xlane.f32.xlu1 %v1454_v13 }
 0x4ee   : > { %v1444_v15 = vpop.f32.mrf.mxu1 }
 0x4ef   : > { %v1445_v16 = vadd.f32 %v2528_v56, %v1444_v15  ;;  %v2446_v56 = vld [vmem:[%s2906_s23 + $0x10] sm:$0xff] }
 0x4f0   : > { %1685 = vmatpush.bf16.msrb.mxu3 %v2446_v56  ;;  %v2534_v56 = vld [vmem:[%s839_s17] ss:$0 sm:$0xff]  ;;  %s3309_s17 = sld [smem:[#allocation20_spill]] (!%p2331_p8) }
 0x4f1   : > { %v1448_v7 = vadd.f32 %v1445_v16, %v2967_v32 }
 0x4f3   : > { %v1455_v17 = vmul.f32 %v2975_v38, %v1448_v7 }
 0x4f4   : > { %1686 = vmatpush.bf16.msrb.mxu3 %v2445_v11 }
 0x4f5   : > { %1458 = vadd.xlane.f32.xlu2 %v1455_v17 }
 0x4f8   : > { %1687 = vmatpush.bf16.msrb.mxu3 %v2444_v2 }
 0x560   : > { %v1457_v18 = vpop.xlane.xlu1 %1456 }
 0x561   : > { %v1460_v45 = vmul.f32 0.03125, %v1457_v18 }
 0x563   : > { %v1462_v20 = vsub.f32 %v1447_v12, %v1460_v45  ;;  %v2531_v12 = vld [vmem:[%s825_s0] ss:$0 sm:$0xff] }
 0x565   : > { %v1464_v21 = vmul.f32 %v2975_v38, %v1462_v20 }
 0x567   : > { %v1466_v31 = vmul.f32 %v1464_v21, %v1464_v21 }
 0x568   : > { %v1459_v22 = vpop.xlane.xlu2 %1458 }
 0x569   : > { %v1461_v23 = vmul.f32 0.03125, %v1459_v22  ;;  %1468 = vadd.xlane.f32.xlu0 %v1466_v31 }
 0x56b   : > { %v1463_v25 = vsub.f32 %v1448_v7, %v1461_v23 }
 0x56d   : > { %v1465_v32 = vmul.f32 %v2975_v38, %v1463_v25 }
 0x56f   : > { %v1467_v26 = vmul.f32 %v1465_v32, %v1465_v32 }
 0x571   : > { %1470 = vadd.xlane.f32.xlu1 %v1467_v26 }
 0x5dc   : > { %v1469_v37 = vpop.xlane.xlu0 %1468 }
 0x5dd   : > { %v1472_v14 = vmul.f32 0.03125, %v1469_v37 }
 0x5df   : > { %v1474_v19 = vadd.f32 1e-12, %v1472_v14  ;;  %v2532_v14 = vld [vmem:[%s833_s16] ss:$0 sm:$0xff] }
 0x5e1   : > { %2567 = vrsqrt.f32 %v1474_v19  ;;  %vm1482_vm13 = vweird.f32 %v1474_v19 }
 0x5e4   : > { %v1471_v40 = vpop.xlane.xlu1 %1470 }
 0x5e5   : > { %v1473_v41 = vmul.f32 0.03125, %v1471_v40 }
 0x5e7   : > { %v2568_v43 = vpop.eup %2567  ;;  %v1475_v44 = vadd.f32 1e-12, %v1473_v41 }
 0x5e8   : > { %v1477_v24 = vmul.f32 %v2568_v43, %v1474_v19  ;;  %vm1483_vm12 = vweird.f32 %v2568_v43 }
 0x5e9   : > { %2569 = vrsqrt.f32 %v1475_v44  ;;  %vm1484_vm14 = vmor %vm1482_vm13, %vm1483_vm12  ;;  %vm1492_vm0 = vweird.f32 %v1475_v44 }
 0x5ea   : > { %v1478_v48 = vmul.f32 %v2568_v43, %v1477_v24 }
 0x5ec   : > { %v1479_v50 = vmul.f32 0.5, %v1478_v48 }
 0x5ee   : > { %v1480_v51 = vsub.f32 1.5, %v1479_v50 }
 0x5ef   : > { %v2570_v29 = vpop.eup %2569 }
 0x5f0   : > { %v1481_v53 = vmul.f32 %v2568_v43, %v1480_v51  ;;  %v1487_v54 = vmul.f32 %v2570_v29, %v1475_v44  ;;  %vm1493_vm15 = vweird.f32 %v2570_v29 }
 0x5f1   : > { %vm1494_vm1 = vmor %vm1492_vm0, %vm1493_vm15 }
 0x5f2   : > { %v1485_v55 = vsel %vm1484_vm14, %v2568_v43, %v1481_v53  ;;  %v1488_v57 = vmul.f32 %v2570_v29, %v1487_v54 }
 0x5f3   : > { %v1496_v58 = vmul.f32 %v1485_v55, %v1462_v20 }
 0x5f4   : > { %v1489_v47 = vmul.f32 0.5, %v1488_v57 }
 0x5f5   : > { %v1501_v59 = vmul.f32 %v2529_v60, %v1496_v58 }
 0x5f6   : > { %v1490_v62 = vsub.f32 1.5, %v1489_v47 }
 0x5f7   : > { %v1506_v5 = vadd.f32 %v2530_v0, %v1501_v59 }
 0x5f8   : > { %v1491_v63 = vmul.f32 %v2570_v29, %v1490_v62 }
 0x5f9   : > { %v1508_v8 = vmul.f32 %v2975_v38, %v1506_v5 }
 0x5fa   : > { %v1495_v1 = vsel %vm1494_vm1, %v2570_v29, %v1491_v63 }
 0x5fb   : > { %v1497_v3 = vmul.f32 %v1495_v1, %v1463_v25 }
 0x5fd   : > { %v1502_v4 = vmul.f32 %v2529_v60, %v1497_v3 }
 0x5ff   : > { %v1507_v6 = vadd.f32 %v2530_v0, %v1502_v4 }
 0x601   : > { %v1509_v9 = vmul.f32 %v2975_v38, %v1507_v6 }
 0x603   : > { %v1510_v61 = vpack.c.bf16 %v1509_v9, %v1508_v8 }
 0x605   : > { %1587 = vmatmul.bf16.vlgmr.msrb.gmra.mxu2 %v1510_v61 }
 0x688   : > { %v1588_v13 = vpop.f32.mrf.mxu2 }
 0x689   : > { %v1589_v15 = vadd.f32 %v2531_v12, %v1588_v13 }
 0x68b   : > { %v1593_v16 = vmul.f32 %v1589_v15, %v1589_v15 }
 0x68d   : > { %v1595_v7 = vmul.f32 %v1593_v16, %v1589_v15 }
 0x68f   : > { %v1597_v17 = vmul.f32 0.044715, %v1595_v7 }
 0x690   : > { %v1590_v18 = vpop.f32.mrf.mxu2 }
 0x691   : > { %v1599_v45 = vadd.f32 %v1597_v17, %v1589_v15  ;;  %v1591_v20 = vadd.f32 %v2531_v12, %v1590_v18 }
 0x693   : > { %v1601_v21 = vmul.f32 0.7978846, %v1599_v45  ;;  %v1594_v31 = vmul.f32 %v1591_v20, %v1591_v20 }
 0x695   : > { %v1596_v22 = vmul.f32 %v1594_v31, %v1591_v20  ;;  %2571 = vtanh.f32 %v1601_v21 }
 0x697   : > { %v1598_v23 = vmul.f32 0.044715, %v1596_v22 }
 0x699   : > { %v1600_v25 = vadd.f32 %v1598_v23, %v1591_v20 }
 0x69b   : > { %v1602_v32 = vmul.f32 0.7978846, %v1600_v25  ;;  %v2572_v26 = vpop.eup %2571 }
 0x69c   : > { %v1605_v27 = vadd.f32 1.0, %v2572_v26 }
 0x69d   : > { %2573 = vtanh.f32 %v1602_v32 }
 0x69e   : > { %v1607_v33 = vmul.f32 0.5, %v1605_v27 }
 0x6a0   : > { %v1609_v36 = vmul.f32 %v1607_v33, %v1589_v15 }
 0x6a3   : > { %v2574_v28 = vpop.eup %2573 }
 0x6a4   : > { %v1606_v30 = vadd.f32 1.0, %v2574_v28 }
 0x6a6   : > { %v1608_v35 = vmul.f32 0.5, %v1606_v30 }
 0x6a8   : > { %v1610_v34 = vmul.f32 %v1608_v35, %v1591_v20 }
 0x6aa   : > { %v1611_v37 = vpack.c.bf16 %v1610_v34, %v1609_v36 }
 0x6ac   : > { %1688 = vmatmul.bf16.vlgmr.msrb.gmra.mxu3 %v1611_v37 }
 0x72f   : > { %v1689_v39 = vpop.f32.mrf.mxu3 }
 0x730   : > { %v1690_v19 = vadd.f32 %v2532_v14, %v1689_v39 }
 0x732   : > { %v1694_v40 = vadd.f32 %v1690_v19, %v1508_v8 }
 0x734   : > { %v1698_v41 = vmul.f32 %v2975_v38, %v1694_v40 }
 0x736   : > { %1700 = vadd.xlane.f32.xlu2 %v1698_v41 }
 0x737   : > { %v1691_v42 = vpop.f32.mrf.mxu3 }
 0x738   : > { %v1692_v43 = vadd.f32 %v2532_v14, %v1691_v42 }
 0x73a   : > { %v1695_v44 = vadd.f32 %v1692_v43, %v1509_v9  ;;  %v2533_v9 = vld [vmem:[%s836_s25] ss:$0 sm:$0xff] }
 0x73c   : > { %v1699_v46 = vmul.f32 %v2975_v38, %v1695_v44 }
 0x73e   : > { %1702 = vadd.xlane.f32.xlu0 %v1699_v46 }
 0x7a9   : > { %v1701_v24 = vpop.xlane.xlu2 %1700 }
 0x7aa   : > { %v1704_v48 = vmul.f32 0.03125, %v1701_v24 }
 0x7ac   : > { %v1706_v49 = vsub.f32 %v1694_v40, %v1704_v48 }
 0x7ae   : > { %v1708_v50 = vmul.f32 %v2975_v38, %v1706_v49 }
 0x7b0   : > { %v1710_v51 = vmul.f32 %v1708_v50, %v1708_v50 }
 0x7b1   : > { %v1703_v29 = vpop.xlane.xlu0 %1702 }
 0x7b2   : > { %v1705_v52 = vmul.f32 0.03125, %v1703_v29  ;;  %1712 = vadd.xlane.f32.xlu1 %v1710_v51 }
 0x7b4   : > { %v1707_v53 = vsub.f32 %v1695_v44, %v1705_v52 }
 0x7b6   : > { %v1709_v54 = vmul.f32 %v2975_v38, %v1707_v53 }
 0x7b8   : > { %v1711_v55 = vmul.f32 %v1709_v54, %v1709_v54 }
 0x7ba   : > { %1714 = vadd.xlane.f32.xlu2 %v1711_v55 }
 0x825   : > { %v1713_v57 = vpop.xlane.xlu1 %1712 }
 0x826   : > { %v1716_v47 = vmul.f32 0.03125, %v1713_v57 }
 0x828   : > { %v1718_v58 = vadd.f32 1e-12, %v1716_v47 }
 0x82a   : > { %2575 = vrsqrt.f32 %v1718_v58  ;;  %vm1726_vm3 = vweird.f32 %v1718_v58 }
 0x82d   : > { %v1715_v60 = vpop.xlane.xlu2 %1714 }
 0x82e   : > { %v1717_v62 = vmul.f32 0.03125, %v1715_v60 }
 0x830   : > { %v2576_v63 = vpop.eup %2575  ;;  %v1719_v59 = vadd.f32 1e-12, %v1717_v62 }
 0x831   : > { %v1721_v0 = vmul.f32 %v2576_v63, %v1718_v58  ;;  %vm1727_vm2 = vweird.f32 %v2576_v63 }
 0x832   : > { %2577 = vrsqrt.f32 %v1719_v59  ;;  %vm1728_vm4 = vmor %vm1726_vm3, %vm1727_vm2  ;;  %vm1736_vm6 = vweird.f32 %v1719_v59 }
 0x833   : > { %v1722_v1 = vmul.f32 %v2576_v63, %v1721_v0 }
 0x835   : > { %v1723_v3 = vmul.f32 0.5, %v1722_v1 }
 0x837   : > { %v1724_v4 = vsub.f32 1.5, %v1723_v3 }
 0x838   : > { %v2578_v5 = vpop.eup %2577 }
 0x839   : > { %v1725_v6 = vmul.f32 %v2576_v63, %v1724_v4  ;;  %v1731_v8 = vmul.f32 %v2578_v5, %v1719_v59  ;;  %vm1737_vm5 = vweird.f32 %v2578_v5 }
 0x83a   : > { %vm1738_vm7 = vmor %vm1736_vm6, %vm1737_vm5 }
 0x83b   : > { %v1729_v61 = vsel %vm1728_vm4, %v2576_v63, %v1725_v6  ;;  %v1732_v10 = vmul.f32 %v2578_v5, %v1731_v8 }
 0x83c   : > { %v1740_v11 = vmul.f32 %v1729_v61, %v1706_v49 }
 0x83d   : > { %v1733_v2 = vmul.f32 0.5, %v1732_v10 }
 0x83e   : > { %v1745_v12 = vmul.f32 %v2533_v9, %v1740_v11 }
 0x83f   : > { %v1734_v13 = vsub.f32 1.5, %v1733_v2 }
 0x840   : > { %v1750_v15 = vadd.f32 %v2534_v56, %v1745_v12 }
 0x841   : > { %v1735_v16 = vmul.f32 %v2578_v5, %v1734_v13 }
 0x842   : > { %v1752_v7 = vmul.f32 %v2975_v38, %v1750_v15 }
 0x843   : > { %v1739_v17 = vsel %vm1738_vm7, %v2578_v5, %v1735_v16 }
 0x844   : > { %1754 = vst [vmem:[#allocation2] sm:$0xff] %v1752_v7  ;;  %v1741_v18 = vmul.f32 %v1739_v17, %v1707_v53 }
 0x846   : > { %v1746_v45 = vmul.f32 %v2533_v9, %v1741_v18 }
 0x848   : > { %v1751_v20 = vadd.f32 %v2534_v56, %v1746_v45  ;;  %1759 = sbr.rel (%p2331_p8) target bundleno = 2533 (0x9e5), region = 116 }
 0x84a   : > { %v1753_v21 = vmul.f32 %v2975_v38, %v1751_v20 }
 0x84c   : > { %1755 = vst [vmem:[#allocation2 + $0x8] sm:$0xff] %v1753_v21 }
 0x84d   : > { %1778 = vmatpush.msra.mxu0 %v1753_v21  ;;  %v1760_v31 = vld [vmem:[%s3309_s17] sm:$0x3]  ;;  %v2459_v22 = vld [vmem:[%s3310_s6 + $0x38] sm:$0xff]  ;;  %v2458_v23 = vld [vmem:[%s3310_s6 + $0x30] sm:$0xff]  ;;  %s3312_s17 = sld [smem:[#allocation22_spill]] }
 0x84e   : > { %1853 = vmatpush.bf16.msra.mxu1 %v2459_v22  ;;  %v2457_v38 = vld [vmem:[%s3310_s6 + $0x28] sm:$0xff]  ;;  %v2456_v25 = vld [vmem:[%s3310_s6 + $0x20] sm:$0xff]  ;;  %v2455_v32 = vld [vmem:[%s3310_s6 + $0x18] sm:$0xff] }
 0x84f   : > { %1779 = vmatpush.msra.mxu0 %v1752_v7  ;;  %v2454_v26 = vld [vmem:[%s3310_s6 + $0x10] sm:$0xff]  ;;  %v2453_v27 = vld [vmem:[%s3310_s6 + $0x8] sm:$0xff]  ;;  %v2452_v28 = vld [vmem:[%s3310_s6] sm:$0xff] }
 0x850   : > { %2332 = vmatmul.msk.f32.vlgmr.msra.gmra.mxu0 %vm1215_vm11, %v1760_v31  ;;  %v2467_v30 = vld [vmem:[%s3311_s30 + $0x38] sm:$0xff]  ;;  %v2466_v33 = vld [vmem:[%s3311_s30 + $0x30] sm:$0xff]  ;;  %v2465_v35 = vld [vmem:[%s3311_s30 + $0x28] sm:$0xff] }
 0x851   : > { %1936 = vmatpush.bf16.msra.mxu2 %v2467_v30  ;;  %v2464_v36 = vld [vmem:[%s3311_s30 + $0x20] sm:$0xff]  ;;  %v2463_v34 = vld [vmem:[%s3311_s30 + $0x18] sm:$0xff]  ;;  %v2462_v39 = vld [vmem:[%s3311_s30 + $0x10] sm:$0xff] }
 0x852   : > { %1854 = vmatpush.bf16.msra.mxu1 %v2458_v23  ;;  %v2461_v19 = vld [vmem:[%s3311_s30 + $0x8] sm:$0xff]  ;;  %v2460_v40 = vld [vmem:[%s3311_s30] sm:$0xff] }
 0x853   : > { %v2579_v41 = vld [vmem:[%s3312_s17] ss:$0 sm:$0xff] }
 0x854   : > { %v2580_v48 = vld [vmem:[%s3313_s29] ss:$0 sm:$0xff] }
 0x855   : > { %1937 = vmatpush.bf16.msra.mxu2 %v2466_v33 }
 0x856   : > { %1855 = vmatpush.bf16.msra.mxu1 %v2457_v38 }
 0x859   : > { %1938 = vmatpush.bf16.msra.mxu2 %v2465_v35 }
 0x85a   : > { %1856 = vmatpush.bf16.msra.mxu1 %v2456_v25 }
 0x85d   : > { %1939 = vmatpush.bf16.msra.mxu2 %v2464_v36 }
 0x85e   : > { %1857 = vmatpush.bf16.msra.mxu1 %v2455_v32 }
 0x861   : > { %1940 = vmatpush.bf16.msra.mxu2 %v2463_v34 }
 0x862   : > { %1858 = vmatpush.bf16.msra.mxu1 %v2454_v26 }
 0x865   : > { %1941 = vmatpush.bf16.msra.mxu2 %v2462_v39 }
 0x866   : > { %1859 = vmatpush.bf16.msra.mxu1 %v2453_v27 }
 0x869   : > { %1942 = vmatpush.bf16.msra.mxu2 %v2461_v19 }
 0x86a   : > { %1860 = vmatpush.bf16.msra.mxu1 %v2452_v28 }
 0x86d   : > { %1943 = vmatpush.bf16.msra.mxu2 %v2460_v40 }
 0x8cd   : > { %v1781_v37 = vpop.f32.mrf.mxu0 }
 0x8ce   : > { %v1784_v14 = vpack.c.bf16 %v1781_v37, %v1781_v37 }
 0x8d0   : > { %1861 = vmatmul.bf16.vlgmr.msra.gmra.mxu1 %v1784_v14 }
 0x94d   : > { %v1862_v42 = vpop.f32.mrf.mxu1 }
 0x94e   : > { %v1863_v43 = vadd.f32 %v2579_v41, %v1862_v42 }
 0x950   : > { %2581 = vtanh.f32 %v1863_v43 }
 0x955   : > { %v1864_v44 = vpop.f32.mrf.mxu1 }
 0x956   : > { %v2582_v46 = vpop.eup %2581 }
 0x957   : > { %v1867_v24 = vpack.c.bf16 %v2582_v46, %v2582_v46 }
 0x959   : > { %1944 = vmatmul.bf16.vlgmr.msra.gmra.mxu2 %v1867_v24 }
 0x9dc   : > { %v1945_v49 = vpop.f32.mrf.mxu2 }
 0x9dd   : > { %v1946_v50 = vadd.f32 %v2580_v48, %v1945_v49 }
 0x9df   : > { %1949 = vst [vmem:[#allocation6] sm:$0x3] %v1946_v50 }
 0x9e4   : > { %v1947_v51 = vpop.f32.mrf.mxu2 }
 0x9e5 PF: > { %p2483_p9 = scmp.eq.s32.totalorder %s2815_s3, 1  ;;  %s2685_s4 = smov [#allocation6]  }
 0x9e6   : > { %s1956_s21 = sshll.u32 %s2685_s4, 4  ;;  %s3314_s5 = sld [smem:[#allocation25_spill]]  ;;  %s1957_s21 = int_to_ptr.vmem [resolvable:$true] %s1956_s21 }
 0x9ec   : > { %s1958_s0 = sshll.u32 %s3314_s5, 4  ;;  %s1959_s0 = int_to_ptr.hbm [resolvable:$true] %s1958_s0 }
 0x9ed   : > { %2475 = dma.vmem_to_hbm [thread:$0]  (%p2483_p9), %s1957_s21, 32, %s1959_s0, [#allocation5]  }
 0x9ee   : > { %2662 = dma.done.wait (%p2483_p9), [#allocation5], 32  }
 0x9ef   : > { %2664 = vsyncadd (%p2483_p9), [#allocation5], 4294967264 }
 0x9f0 PF: > { %s3315_s27 = sld [smem:[#allocation11_spill]] }
 0x9f1   : > { %s3316_s2 = sld [smem:[#allocation9_spill]] }
 0x9f2   : > { %s3317_s25 = sld [smem:[#allocation10_spill]] }
 0x9f3   : > { %s3318_s26 = sld [smem:[#allocation12_spill]] }
 0x9f6   : > { %p32_p10 = scmp.ge.s32.totalorder %s3315_s27, 4  }
 0x9f8   :  { %34 = sbr.rel (!%p32_p10) target bundleno = 18 (0x12), region = 182 }
 0x9fd   :  { %1972 = vsyncpa [#allocation4], 1 }
 0x9fe   :  { %1974 = vsyncpa [#allocation4 + $0x1], 1 }
 0x9ff   :  { %1975 = vsyncpa [#allocation5], 1 }
 0xa00   :  { %1977 = vsyncpa [#allocation5 + $0x1], 1 }

</bundles_post_ra>
